<compile_context>
chip_gen: v7x
topology: tpu7x:2x2x1
jax: 0.10.0
libtpu: 0.0.40
codegen_flags: <defaults>
</compile_context>

<pallas_src>
import functools

import jax
import jax.numpy as jnp
from jax.experimental import pallas as pl
from jax.experimental.pallas import tpu as pltpu

DP = 128                      # lane-padded feature width
NUM_LAYERS = 4
SLAB_ROWS = 2 * DP + 16       # [wm rows | wu rows | bias row (sublane-padded)]
HEAD_ROWS = 3 * DP + 16       # [w1m | w1x | w2 | bias rows (sublane-padded)]


# ----------------------------------------------------------------------------
# Fused kernel: 4 GN blocks (grid axis) + head on the last iteration
# ----------------------------------------------------------------------------
def gnn_fused_kernel(x0_ref, src_ref, dst_ref, dstT_ref, g_ref, gT_ref,
                     slab_ref, head_ref, alpha_ref,
                     o_ref, h_scr, inv_scr):
    l = pl.program_id(0)
    last = pl.num_programs(0) - 1
    f32 = jnp.float32
    bf16 = jnp.bfloat16

    # SMEM scalar read hoisted above all vector work.
    alpha = alpha_ref[l]

    @pl.when(l == 0)
    def _():
        h_scr[...] = x0_ref[...]
        cnt = jnp.sum(g_ref[...].astype(f32), axis=1, keepdims=True)   # [B, 1]
        inv_scr[...] = 1.0 / jnp.maximum(cnt, 1.0)                      # exact divide

    x = h_scr[...]                          # [N, DP] f32  (carried node state)
    xb = x.astype(bf16)
    inv_cnt = inv_scr[...]                  # [B, 1]  f32

    # one-hots stay bf16 end-to-end (MXU inputs only, f32 accumulation)
    src = src_ref[...]                      # [E, N] bf16
    dst = dst_ref[...]                      # [E, N] bf16
    dstT = dstT_ref[...]                    # [N, E] bf16
    g = g_ref[...]                          # [B, N] bf16
    gT = gT_ref[...]                        # [N, B] bf16

    # --- per-layer weight slab (bf16), sliced at 128-aligned offsets ---
    wm = slab_ref[0:DP, :]                  # [DP, 2DP]  ([Wm_dst | Wm_src])
    wu_x = slab_ref[DP:2 * DP, 0:DP]        # [DP, DP]
    wu_a = slab_ref[DP:2 * DP, DP:]         # [DP, DP]
    b_row = slab_ref[2 * DP:2 * DP + 1, :].astype(f32)   # [1, 2DP]
    bm = b_row[:, 0:DP]
    bu = b_row[:, DP:]

    # --- message MLP (reassociated): project at node level, combine at edge level ---
    p = jnp.dot(xb, wm, preferred_element_type=f32)                  # [N, 2DP] f32
    pb = p.astype(bf16)
    msg = (jnp.dot(dst, pb[:, 0:DP], preferred_element_type=f32)
           + jnp.dot(src, pb[:, DP:], preferred_element_type=f32)
           + bm)                                                     # [E, DP] f32
    msg = jnp.maximum(msg, 0.0)

    # --- scatter-sum aggregation to destination nodes ---
    agg = jnp.dot(dstT, msg.astype(bf16), preferred_element_type=f32)   # [N, DP]

    # --- node update: split matmuls (no lane-dim concatenate) ---
    h = (jnp.dot(xb, wu_x, preferred_element_type=f32)
         + jnp.dot(agg.astype(bf16), wu_a, preferred_element_type=f32)
         + bu)                                                       # [N, DP] f32

    # --- PReLU (single shared alpha per block, torch default init 0.25) ---
    h = jnp.where(h >= 0.0, h, alpha * h)

    # --- InstanceNorm per graph (affine=False, eps=1e-5); var = E[h^2] - mean^2 ---
    sum_h = jnp.dot(g, h.astype(bf16), preferred_element_type=f32)          # [B, DP]
    sum_h2 = jnp.dot(g, (h * h).astype(bf16), preferred_element_type=f32)   # [B, DP]
    mean_g = sum_h * inv_cnt
    var_g = jnp.maximum(sum_h2 * inv_cnt - mean_g * mean_g, 0.0)
    mean_n = jnp.dot(gT, mean_g.astype(bf16), preferred_element_type=f32)   # [N, DP]
    var_n = jnp.dot(gT, var_g.astype(bf16), preferred_element_type=f32)     # [N, DP]
    h_out = (h - mean_n) * jax.lax.rsqrt(var_n + 1e-5)
    h_scr[...] = h_out

    # --- head: [mean_pool | max_pool] -> Linear -> ReLU -> Linear (last layer only) ---
    @pl.when(l == last)
    def _():
        w1m = head_ref[0:DP, :]                                      # [DP, DP] bf16
        w1x = head_ref[DP:2 * DP, :]                                 # [DP, DP] bf16
        w2 = head_ref[2 * DP:3 * DP, :]                              # [DP, DP] bf16
        hb = head_ref[3 * DP:3 * DP + 2, :].astype(f32)              # [2, DP]
        b1 = hb[0:1, :]
        b2 = hb[1:2, :]

        mean_pool = (jnp.dot(g, h_out.astype(bf16), preferred_element_type=f32)
                     * inv_cnt)                                      # [B, DP]

        # max pool via 2-D additive mask (B is small & static; no [B,N,H] broadcast)
        mask_nb = (gT.astype(f32) - 1.0) * 1e30                      # [N, B]: 0 / -1e30
        pools = []
        for b in range(mask_nb.shape[1]):
            masked = h_out + mask_nb[:, b:b + 1]                     # [N, DP]
            pools.append(jnp.max(masked, axis=0, keepdims=True))     # [1, DP]
        max_pool = jnp.concatenate(pools, axis=0)                    # [B, DP]

        z = jnp.maximum(
            jnp.dot(mean_pool.astype(bf16), w1m, preferred_element_type=f32)
            + jnp.dot(max_pool.astype(bf16), w1x, preferred_element_type=f32)
            + b1, 0.0)                                               # [B, DP]
        o_ref[...] = (jnp.dot(z.astype(bf16), w2, preferred_element_type=f32)
                      + b2)                                          # [B, DP] (lane-padded)


# ----------------------------------------------------------------------------
# Wrapper
# ----------------------------------------------------------------------------
def gnn_fused(x0, src_oh, dst_oh, dst_oh_T, g_oh, g_oh_T, params):
    N, dp = x0.shape
    E = src_oh.shape[0]
    B = g_oh.shape[0]
    L = params["slab"].shape[0]

    def _const(shape):
        return pl.BlockSpec(shape, lambda l: (0,) * len(shape))

    grid_spec = pltpu.PrefetchScalarGridSpec(
        num_scalar_prefetch=0,
        grid=(L,),
        in_specs=[
            _const((N, dp)),                  # x0 f32 (constant index -> DMA'd once)
            _const((E, N)),                   # src one-hot   bf16
            _const((E, N)),                   # dst one-hot   bf16
            _const((N, E)),                   # dst one-hot^T bf16
            _const((B, N)),                   # graph one-hot bf16
            _const((N, B)),                   # graph one-hot^T bf16
            pl.BlockSpec((None, SLAB_ROWS, 2 * dp), lambda l: (l, 0, 0)),  # layer slab
            _const((HEAD_ROWS, dp)),          # head slab bf16 (constant index)
            pl.BlockSpec(memory_space=pltpu.MemorySpace.SMEM),             # alpha [L]
        ],
        out_specs=pl.BlockSpec((B, dp), lambda l: (0, 0)),
        scratch_shapes=[
            pltpu.VMEM((N, dp), jnp.float32),   # carried node state h
            pltpu.VMEM((B, 1), jnp.float32),    # per-graph 1 / node count
        ],
    )
    return pl.pallas_call(
        gnn_fused_kernel,
        out_shape=jax.ShapeDtypeStruct((B, dp), jnp.float32),
        grid_spec=grid_spec,
        compiler_params=pltpu.CompilerParams(
            dimension_semantics=("arbitrary",)),
    )(x0, src_oh, dst_oh, dst_oh_T, g_oh, g_oh_T,
      params["slab"], params["head"], params["alpha"])


@functools.partial(jax.jit, static_argnames=("outdim",))
def gnn_forward(x0, src_oh, dst_oh, dst_oh_T, g_oh, g_oh_T, params, *, outdim):
    out_padded = gnn_fused(x0, src_oh, dst_oh, dst_oh_T, g_oh, g_oh_T, params)
    return out_padded[:, :outdim]


# ----------------------------------------------------------------------------
# Parameter construction (packed bf16 slabs, lane-padded to DP)
# ----------------------------------------------------------------------------
def init_params(key, indim, hidden, outdim):
    keys = jax.random.split(key, NUM_LAYERS * 6 + 5)
    ki = 0
    slabs = []
    for layer in range(NUM_LAYERS):
        din = indim if layer == 0 else hidden
        s_m = 1.0 / jnp.sqrt(2.0 * din)
        s_u = 1.0 / jnp.sqrt(float(din + hidden))
        wm_d = jax.random.normal(keys[ki + 0], (din, hidden), jnp.float32) * s_m
        wm_s = jax.random.normal(keys[ki + 1], (din, hidden), jnp.float32) * s_m
        wu_x = jax.random.normal(keys[ki + 2], (din, hidden), jnp.float32) * s_u
        wu_a = jax.random.normal(keys[ki + 3], (hidden, hidden), jnp.float32) * s_u
        bm = jax.random.normal(keys[ki + 4], (hidden,), jnp.float32) * s_m
        bu = jax.random.normal(keys[ki + 5], (hidden,), jnp.float32) * s_u
        ki += 6

        slab = jnp.zeros((SLAB_ROWS, 2 * DP), jnp.float32)
        slab = slab.at[:din, :hidden].set(wm_d)                  # Wm_dst
        slab = slab.at[:din, DP:DP + hidden].set(wm_s)           # Wm_src
        slab = slab.at[DP:DP + din, :hidden].set(wu_x)           # Wu_x
        slab = slab.at[DP:DP + hidden, DP:DP + hidden].set(wu_a) # Wu_agg
        slab = slab.at[2 * DP, :hidden].set(bm)                  # b_m
        slab = slab.at[2 * DP, DP:DP + hidden].set(bu)           # b_u
        slabs.append(slab)

    s1 = 1.0 / jnp.sqrt(2.0 * hidden)
    s2 = 1.0 / jnp.sqrt(float(hidden))
    w1m = jax.random.normal(keys[ki + 0], (hidden, hidden), jnp.float32) * s1
    w1x = jax.random.normal(keys[ki + 1], (hidden, hidden), jnp.float32) * s1
    w2 = jax.random.normal(keys[ki + 2], (hidden, outdim), jnp.float32) * s2
    b1 = jax.random.normal(keys[ki + 3], (hidden,), jnp.float32) * s1
    b2 = jax.random.normal(keys[ki + 4], (outdim,), jnp.float32) * s2

    head = jnp.zeros((HEAD_ROWS, DP), jnp.float32)
    head = head.at[:hidden, :hidden].set(w1m)
    head = head.at[DP:DP + hidden, :hidden].set(w1x)
    head = head.at[2 * DP:2 * DP + hidden, :outdim].set(w2)
    head = head.at[3 * DP, :hidden].set(b1)
    head = head.at[3 * DP + 1, :outdim].set(b2)

    return {
        "slab": jnp.stack(slabs).astype(jnp.bfloat16),            # [L, 272, 256] bf16
        "head": head.astype(jnp.bfloat16),                        # [400, 128]   bf16
        "alpha": jnp.full((NUM_LAYERS,), 0.25, jnp.float32),      # nn.PReLU default
    }


# ----------------------------------------------------------------------------
# Driver
# ----------------------------------------------------------------------------
if __name__ == "__main__":
    indim, hidden, outdim = 8, 32, 4          # GNN(indim, hiddendim, outdim), edgedim=0
    N, E, B = 16, 48, 2                       # nodes, edges, graphs in the batch

    key = jax.random.PRNGKey(0)
    kx, ke, kp = jax.random.split(key, 3)

    # node features (data.x), lane-padded to DP
    x = jax.random.normal(kx, (N, indim), jnp.float32)
    x0 = jnp.zeros((N, DP), jnp.float32).at[:, :indim].set(x)

    # batch assignment: first N//2 nodes -> graph 0, rest -> graph 1  (data.batch)
    batch = jnp.concatenate([jnp.zeros((N // 2,), jnp.int32),
                             jnp.ones((N - N // 2,), jnp.int32)])

    # random intra-graph edges (data.edge_index, shape [2, E])
    ks, kd = jax.random.split(ke)
    half = N // 2
    src0 = jax.random.randint(ks, (E // 2,), 0, half)
    dst0 = jax.random.randint(kd, (E // 2,), 0, half)
    src1 = jax.random.randint(ks, (E - E // 2,), half, N)
    dst1 = jax.random.randint(kd, (E - E // 2,), half, N)
    edge_index = jnp.stack([jnp.concatenate([src0, src1]),
                            jnp.concatenate([dst0, dst1])])          # [2, E]

    # one-hot operands (bf16 is lossless for one-hots); transposes built host-side once
    src_oh = jax.nn.one_hot(edge_index[0], N, dtype=jnp.bfloat16)    # [E, N]
    dst_oh = jax.nn.one_hot(edge_index[1], N, dtype=jnp.bfloat16)    # [E, N]
    dst_oh_T = dst_oh.T                                              # [N, E]
    g_oh = jax.nn.one_hot(batch, B, dtype=jnp.bfloat16).T            # [B, N]
    g_oh_T = g_oh.T                                                  # [N, B]

    params = init_params(kp, indim, hidden, outdim)

    out = gnn_forward(x0, src_oh, dst_oh, dst_oh_T, g_oh, g_oh_T, params,
                      outdim=outdim)
    jax.block_until_ready(out)
    assert out.shape == (B, outdim)
    assert bool(jnp.all(jnp.isfinite(out)))
    print("KERNEL_OK")
</pallas_src>

<mosaic_0001>
module attributes {stable_mosaic.version = 11 : i64} {
  func.func @gnn_fused_kernel(%arg0: i32, %arg1: memref<16x128xf32, #tpu.memory_space<vmem>>, %arg2: memref<48x16xbf16, #tpu.memory_space<vmem>>, %arg3: memref<48x16xbf16, #tpu.memory_space<vmem>>, %arg4: memref<16x48xbf16, #tpu.memory_space<vmem>>, %arg5: memref<2x16xbf16, #tpu.memory_space<vmem>>, %arg6: memref<16x2xbf16, #tpu.memory_space<vmem>>, %arg7: memref<1x272x256xbf16, #tpu.memory_space<vmem>>, %arg8: memref<400x128xbf16, #tpu.memory_space<vmem>>, %arg9: memref<4xf32, #tpu.memory_space<smem>>, %arg10: memref<2x128xf32, #tpu.memory_space<vmem>>, %arg11: memref<16x128xf32, #tpu.memory_space<vmem>>, %arg12: memref<2x1xf32, #tpu.memory_space<vmem>>) attributes {dimension_semantics = [#tpu.dimension_semantics<arbitrary>], iteration_bounds = array<i64: 4>, scalar_prefetch = 0 : i64, scratch_operands = 2 : i64, tpu.core_type = #tpu.core_type<tc>, window_params = [{pipeline_mode = #tpu.pipeline_mode<synchronous>, transform_indices = @transform_0, window_bounds = array<i64: 16, 128>}, {pipeline_mode = #tpu.pipeline_mode<synchronous>, transform_indices = @transform_1, window_bounds = array<i64: 48, 16>}, {pipeline_mode = #tpu.pipeline_mode<synchronous>, transform_indices = @transform_2, window_bounds = array<i64: 48, 16>}, {pipeline_mode = #tpu.pipeline_mode<synchronous>, transform_indices = @transform_3, window_bounds = array<i64: 16, 48>}, {pipeline_mode = #tpu.pipeline_mode<synchronous>, transform_indices = @transform_4, window_bounds = array<i64: 2, 16>}, {pipeline_mode = #tpu.pipeline_mode<synchronous>, transform_indices = @transform_5, window_bounds = array<i64: 16, 2>}, {transform_indices = @transform_6, window_bounds = array<i64: 1, 272, 256>}, {pipeline_mode = #tpu.pipeline_mode<synchronous>, transform_indices = @transform_7, window_bounds = array<i64: 400, 128>}, {transform_indices = @transform_8, window_bounds = array<i64: 4>}, {pipeline_mode = #tpu.pipeline_mode<synchronous>, transform_indices = @transform_9, window_bounds = array<i64: 2, 128>}]} {
    %0 = arith.index_cast %arg0 : i32 to index
    %1 = memref.load %arg9[%0] : memref<4xf32, #tpu.memory_space<smem>>
    %c0_i32 = arith.constant 0 : i32
    %2 = arith.cmpi eq, %arg0, %c0_i32 : i32
    %3 = arith.extui %2 : i1 to i32
    %c0_i32_0 = arith.constant 0 : i32
    %4 = arith.cmpi ne, %3, %c0_i32_0 : i32
    scf.if %4 {
      %c0_40 = arith.constant 0 : index
      %c0_41 = arith.constant 0 : index
      %74 = vector.load %arg1[%c0_40, %c0_41] : memref<16x128xf32, #tpu.memory_space<vmem>>, vector<16x128xf32>
      %c0_42 = arith.constant 0 : index
      %c0_43 = arith.constant 0 : index
      %75 = vector.load %arg11[%c0_42, %c0_43] : memref<16x128xf32, #tpu.memory_space<vmem>>, vector<16x128xf32>
      tpu.vector_store %arg11[%c0_42, %c0_43], %74 {strides = array<i32>} : memref<16x128xf32, #tpu.memory_space<vmem>>, vector<16x128xf32>,
      %c0_44 = arith.constant 0 : index
      %c0_45 = arith.constant 0 : index
      %76 = vector.load %arg5[%c0_44, %c0_45] : memref<2x16xbf16, #tpu.memory_space<vmem>>, vector<2x16xbf16>
      %77 = arith.extf %76 : vector<2x16xbf16> to vector<2x16xf32>
      %cst_46 = arith.constant dense<0.000000e+00> : vector<2xf32>
      %78 = vector.multi_reduction <add>, %77, %cst_46 [1] : vector<2x16xf32> to vector<2xf32>
      %79 = vector.shape_cast %78 : vector<2xf32> to vector<2x1xf32>
      %cst_47 = arith.constant 1.000000e+00 : f32
      %80 = vector.broadcast %cst_47 : f32 to vector<2x1xf32>
      %81 = arith.maximumf %79, %80 : vector<2x1xf32>
      %cst_48 = arith.constant 1.000000e+00 : f32
      %82 = vector.broadcast %cst_48 : f32 to vector<2x1xf32>
      %83 = arith.divf %82, %81 : vector<2x1xf32>
      %c0_49 = arith.constant 0 : index
      %c0_50 = arith.constant 0 : index
      %84 = vector.load %arg12[%c0_49, %c0_50] : memref<2x1xf32, #tpu.memory_space<vmem>>, vector<2x1xf32>
      tpu.vector_store %arg12[%c0_49, %c0_50], %83 {strides = array<i32>} : memref<2x1xf32, #tpu.memory_space<vmem>>, vector<2x1xf32>,
    } else {
    }
    %c0 = arith.constant 0 : index
    %c0_1 = arith.constant 0 : index
    %5 = vector.load %arg11[%c0, %c0_1] : memref<16x128xf32, #tpu.memory_space<vmem>>, vector<16x128xf32>
    %6 = arith.truncf %5 : vector<16x128xf32> to vector<16x128xbf16>
    %c0_2 = arith.constant 0 : index
    %c0_3 = arith.constant 0 : index
    %7 = vector.load %arg12[%c0_2, %c0_3] : memref<2x1xf32, #tpu.memory_space<vmem>>, vector<2x1xf32>
    %c0_4 = arith.constant 0 : index
    %c0_5 = arith.constant 0 : index
    %8 = vector.load %arg2[%c0_4, %c0_5] : memref<48x16xbf16, #tpu.memory_space<vmem>>, vector<48x16xbf16>
    %c0_6 = arith.constant 0 : index
    %c0_7 = arith.constant 0 : index
    %9 = vector.load %arg3[%c0_6, %c0_7] : memref<48x16xbf16, #tpu.memory_space<vmem>>, vector<48x16xbf16>
    %c0_8 = arith.constant 0 : index
    %c0_9 = arith.constant 0 : index
    %10 = vector.load %arg4[%c0_8, %c0_9] : memref<16x48xbf16, #tpu.memory_space<vmem>>, vector<16x48xbf16>
    %c0_10 = arith.constant 0 : index
    %c0_11 = arith.constant 0 : index
    %11 = vector.load %arg5[%c0_10, %c0_11] : memref<2x16xbf16, #tpu.memory_space<vmem>>, vector<2x16xbf16>
    %c0_12 = arith.constant 0 : index
    %c0_13 = arith.constant 0 : index
    %12 = vector.load %arg6[%c0_12, %c0_13] : memref<16x2xbf16, #tpu.memory_space<vmem>>, vector<16x2xbf16>
    %c0_14 = arith.constant 0 : index
    %c0_15 = arith.constant 0 : index
    %c0_16 = arith.constant 0 : index
    %13 = vector.load %arg7[%c0_14, %c0_15, %c0_16] : memref<1x272x256xbf16, #tpu.memory_space<vmem>>, vector<1x128x256xbf16>
    %14 = vector.shape_cast %13 : vector<1x128x256xbf16> to vector<128x256xbf16>
    %c0_17 = arith.constant 0 : index
    %c128 = arith.constant 128 : index
    %c0_18 = arith.constant 0 : index
    %15 = vector.load %arg7[%c0_17, %c128, %c0_18] : memref<1x272x256xbf16, #tpu.memory_space<vmem>>, vector<1x128x128xbf16>
    %16 = vector.shape_cast %15 : vector<1x128x128xbf16> to vector<128x128xbf16>
    %c0_19 = arith.constant 0 : index
    %c128_20 = arith.constant 128 : index
    %c128_21 = arith.constant 128 : index
    %17 = vector.load %arg7[%c0_19, %c128_20, %c128_21] : memref<1x272x256xbf16, #tpu.memory_space<vmem>>, vector<1x128x128xbf16>
    %18 = vector.shape_cast %17 : vector<1x128x128xbf16> to vector<128x128xbf16>
    %c0_22 = arith.constant 0 : index
    %c256 = arith.constant 256 : index
    %c0_23 = arith.constant 0 : index
    %19 = vector.load %arg7[%c0_22, %c256, %c0_23] : memref<1x272x256xbf16, #tpu.memory_space<vmem>>, vector<1x1x256xbf16>
    %20 = vector.shape_cast %19 : vector<1x1x256xbf16> to vector<1x256xbf16>
    %21 = arith.extf %20 : vector<1x256xbf16> to vector<1x256xf32>
    %22 = vector.extract_strided_slice %21 {offsets = [0, 0], sizes = [1, 128], strides = [1, 1]} : vector<1x256xf32> to vector<1x128xf32>
    %23 = vector.extract_strided_slice %21 {offsets = [0, 128], sizes = [1, 128], strides = [1, 1]} : vector<1x256xf32> to vector<1x128xf32>
    %cst = arith.constant dense<0.000000e+00> : vector<16x256xf32>
    %24 = tpu.matmul %6, %14, %cst {dimension_numbers = #tpu.dot_dimension_numbers<[1], [0], [0], [1], [0, 0, 1, 1], [], []>} : vector<16x128xbf16>, vector<128x256xbf16>, vector<16x256xf32> -> vector<16x256xf32>
    %25 = arith.truncf %24 : vector<16x256xf32> to vector<16x256xbf16>
    %26 = vector.extract_strided_slice %25 {offsets = [0, 0], sizes = [16, 128], strides = [1, 1]} : vector<16x256xbf16> to vector<16x128xbf16>
    %cst_24 = arith.constant dense<0.000000e+00> : vector<48x128xf32>
    %27 = tpu.matmul %9, %26, %cst_24 {dimension_numbers = #tpu.dot_dimension_numbers<[1], [0], [0], [1], [0, 0, 1, 1], [], []>} : vector<48x16xbf16>, vector<16x128xbf16>, vector<48x128xf32> -> vector<48x128xf32>
    %28 = vector.extract_strided_slice %25 {offsets = [0, 128], sizes = [16, 128], strides = [1, 1]} : vector<16x256xbf16> to vector<16x128xbf16>
    %cst_25 = arith.constant dense<0.000000e+00> : vector<48x128xf32>
    %29 = tpu.matmul %8, %28, %cst_25 {dimension_numbers = #tpu.dot_dimension_numbers<[1], [0], [0], [1], [0, 0, 1, 1], [], []>} : vector<48x16xbf16>, vector<16x128xbf16>, vector<48x128xf32> -> vector<48x128xf32>
    %30 = arith.addf %27, %29 : vector<48x128xf32>
    %31 = vector.broadcast %22 : vector<1x128xf32> to vector<48x128xf32>
    %32 = arith.addf %30, %31 : vector<48x128xf32>
    %cst_26 = arith.constant 0.000000e+00 : f32
    %33 = vector.broadcast %cst_26 : f32 to vector<48x128xf32>
    %34 = arith.maximumf %32, %33 : vector<48x128xf32>
    %35 = arith.truncf %34 : vector<48x128xf32> to vector<48x128xbf16>
    %cst_27 = arith.constant dense<0.000000e+00> : vector<16x128xf32>
    %36 = tpu.matmul %10, %35, %cst_27 {dimension_numbers = #tpu.dot_dimension_numbers<[1], [0], [0], [1], [0, 0, 1, 1], [], []>} : vector<16x48xbf16>, vector<48x128xbf16>, vector<16x128xf32> -> vector<16x128xf32>
    %cst_28 = arith.constant dense<0.000000e+00> : vector<16x128xf32>
    %37 = tpu.matmul %6, %16, %cst_28 {dimension_numbers = #tpu.dot_dimension_numbers<[1], [0], [0], [1], [0, 0, 1, 1], [], []>} : vector<16x128xbf16>, vector<128x128xbf16>, vector<16x128xf32> -> vector<16x128xf32>
    %38 = arith.truncf %36 : vector<16x128xf32> to vector<16x128xbf16>
    %cst_29 = arith.constant dense<0.000000e+00> : vector<16x128xf32>
    %39 = tpu.matmul %38, %18, %cst_29 {dimension_numbers = #tpu.dot_dimension_numbers<[1], [0], [0], [1], [0, 0, 1, 1], [], []>} : vector<16x128xbf16>, vector<128x128xbf16>, vector<16x128xf32> -> vector<16x128xf32>
    %40 = arith.addf %37, %39 : vector<16x128xf32>
    %41 = vector.broadcast %23 : vector<1x128xf32> to vector<16x128xf32>
    %42 = arith.addf %40, %41 : vector<16x128xf32>
    %cst_30 = arith.constant 0.000000e+00 : f32
    %43 = vector.broadcast %cst_30 : f32 to vector<16x128xf32>
    %44 = arith.cmpf oge, %42, %43 : vector<16x128xf32>
    %45 = vector.broadcast %1 : f32 to vector<16x128xf32>
    %46 = arith.mulf %45, %42 : vector<16x128xf32>
    %47 = arith.select %44, %42, %46 : vector<16x128xi1>, vector<16x128xf32>
    %48 = arith.truncf %47 : vector<16x128xf32> to vector<16x128xbf16>
    %cst_31 = arith.constant dense<0.000000e+00> : vector<2x128xf32>
    %49 = tpu.matmul %11, %48, %cst_31 {dimension_numbers = #tpu.dot_dimension_numbers<[1], [0], [0], [1], [0, 0, 1, 1], [], []>} : vector<2x16xbf16>, vector<16x128xbf16>, vector<2x128xf32> -> vector<2x128xf32>
    %50 = arith.mulf %47, %47 : vector<16x128xf32>
    %51 = arith.truncf %50 : vector<16x128xf32> to vector<16x128xbf16>
    %cst_32 = arith.constant dense<0.000000e+00> : vector<2x128xf32>
    %52 = tpu.matmul %11, %51, %cst_32 {dimension_numbers = #tpu.dot_dimension_numbers<[1], [0], [0], [1], [0, 0, 1, 1], [], []>} : vector<2x16xbf16>, vector<16x128xbf16>, vector<2x128xf32> -> vector<2x128xf32>
    %53 = vector.broadcast %7 : vector<2x1xf32> to vector<2x128xf32>
    %54 = arith.mulf %49, %53 : vector<2x128xf32>
    %55 = vector.broadcast %7 : vector<2x1xf32> to vector<2x128xf32>
    %56 = arith.mulf %52, %55 : vector<2x128xf32>
    %57 = arith.mulf %54, %54 : vector<2x128xf32>
    %58 = arith.subf %56, %57 : vector<2x128xf32>
    %cst_33 = arith.constant 0.000000e+00 : f32
    %59 = vector.broadcast %cst_33 : f32 to vector<2x128xf32>
    %60 = arith.maximumf %58, %59 : vector<2x128xf32>
    %61 = arith.truncf %54 : vector<2x128xf32> to vector<2x128xbf16>
    %cst_34 = arith.constant dense<0.000000e+00> : vector<16x128xf32>
    %62 = tpu.matmul %12, %61, %cst_34 {dimension_numbers = #tpu.dot_dimension_numbers<[1], [0], [0], [1], [0, 0, 1, 1], [], []>} : vector<16x2xbf16>, vector<2x128xbf16>, vector<16x128xf32> -> vector<16x128xf32>
    %63 = arith.truncf %60 : vector<2x128xf32> to vector<2x128xbf16>
    %cst_35 = arith.constant dense<0.000000e+00> : vector<16x128xf32>
    %64 = tpu.matmul %12, %63, %cst_35 {dimension_numbers = #tpu.dot_dimension_numbers<[1], [0], [0], [1], [0, 0, 1, 1], [], []>} : vector<16x2xbf16>, vector<2x128xbf16>, vector<16x128xf32> -> vector<16x128xf32>
    %65 = arith.subf %47, %62 : vector<16x128xf32>
    %cst_36 = arith.constant 9.99999974E-6 : f32
    %66 = vector.broadcast %cst_36 : f32 to vector<16x128xf32>
    %67 = arith.addf %64, %66 : vector<16x128xf32>
    %68 = math.rsqrt %67 : vector<16x128xf32>
    %69 = arith.mulf %65, %68 : vector<16x128xf32>
    %c0_37 = arith.constant 0 : index
    %c0_38 = arith.constant 0 : index
    %70 = vector.load %arg11[%c0_37, %c0_38] : memref<16x128xf32, #tpu.memory_space<vmem>>, vector<16x128xf32>
    tpu.vector_store %arg11[%c0_37, %c0_38], %69 {strides = array<i32>} : memref<16x128xf32, #tpu.memory_space<vmem>>, vector<16x128xf32>,
    %c3_i32 = arith.constant 3 : i32
    %71 = arith.cmpi eq, %arg0, %c3_i32 : i32
    %72 = arith.extui %71 : i1 to i32
    %c0_i32_39 = arith.constant 0 : i32
    %73 = arith.cmpi ne, %72, %c0_i32_39 : i32
    scf.if %73 {
      %c0_40 = arith.constant 0 : index
      %c0_41 = arith.constant 0 : index
      %74 = vector.load %arg8[%c0_40, %c0_41] : memref<400x128xbf16, #tpu.memory_space<vmem>>, vector<128x128xbf16>
      %c128_42 = arith.constant 128 : index
      %c0_43 = arith.constant 0 : index
      %75 = vector.load %arg8[%c128_42, %c0_43] : memref<400x128xbf16, #tpu.memory_space<vmem>>, vector<128x128xbf16>
      %c256_44 = arith.constant 256 : index
      %c0_45 = arith.constant 0 : index
      %76 = vector.load %arg8[%c256_44, %c0_45] : memref<400x128xbf16, #tpu.memory_space<vmem>>, vector<128x128xbf16>
      %c384 = arith.constant 384 : index
      %c0_46 = arith.constant 0 : index
      %77 = vector.load %arg8[%c384, %c0_46] : memref<400x128xbf16, #tpu.memory_space<vmem>>, vector<2x128xbf16>
      %78 = arith.extf %77 : vector<2x128xbf16> to vector<2x128xf32>
      %79 = vector.extract_strided_slice %78 {offsets = [0, 0], sizes = [1, 128], strides = [1, 1]} : vector<2x128xf32> to vector<1x128xf32>
      %80 = vector.extract_strided_slice %78 {offsets = [1, 0], sizes = [1, 128], strides = [1, 1]} : vector<2x128xf32> to vector<1x128xf32>
      %81 = arith.truncf %69 : vector<16x128xf32> to vector<16x128xbf16>
      %cst_47 = arith.constant dense<0.000000e+00> : vector<2x128xf32>
      %82 = tpu.matmul %11, %81, %cst_47 {dimension_numbers = #tpu.dot_dimension_numbers<[1], [0], [0], [1], [0, 0, 1, 1], [], []>} : vector<2x16xbf16>, vector<16x128xbf16>, vector<2x128xf32> -> vector<2x128xf32>
      %83 = vector.broadcast %7 : vector<2x1xf32> to vector<2x128xf32>
      %84 = arith.mulf %82, %83 : vector<2x128xf32>
      %85 = arith.extf %12 : vector<16x2xbf16> to vector<16x2xf32>
      %cst_48 = arith.constant 1.000000e+00 : f32
      %86 = vector.broadcast %cst_48 : f32 to vector<16x2xf32>
      %87 = arith.subf %85, %86 : vector<16x2xf32>
      %cst_49 = arith.constant 1.000000e+30 : f32
      %88 = vector.broadcast %cst_49 : f32 to vector<16x2xf32>
      %89 = arith.mulf %87, %88 : vector<16x2xf32>
      %90 = vector.extract_strided_slice %89 {offsets = [0, 0], sizes = [16, 1], strides = [1, 1]} : vector<16x2xf32> to vector<16x1xf32>
      %91 = vector.broadcast %90 : vector<16x1xf32> to vector<16x128xf32>
      %92 = arith.addf %69, %91 : vector<16x128xf32>
      %cst_50 = arith.constant dense<0xFF800000> : vector<128xf32>
      %93 = vector.multi_reduction <maximumf>, %92, %cst_50 [0] : vector<16x128xf32> to vector<128xf32>
      %94 = vector.shape_cast %93 : vector<128xf32> to vector<1x128xf32>
      %95 = vector.extract_strided_slice %89 {offsets = [0, 1], sizes = [16, 1], strides = [1, 1]} : vector<16x2xf32> to vector<16x1xf32>
      %96 = vector.broadcast %95 : vector<16x1xf32> to vector<16x128xf32>
      %97 = arith.addf %69, %96 : vector<16x128xf32>
      %cst_51 = arith.constant dense<0xFF800000> : vector<128xf32>
      %98 = vector.multi_reduction <maximumf>, %97, %cst_51 [0] : vector<16x128xf32> to vector<128xf32>
      %99 = vector.shape_cast %98 : vector<128xf32> to vector<1x128xf32>
      %100 = tpu.concatenate %94, %99 in 0 : vector<1x128xf32>, vector<1x128xf32> -> vector<2x128xf32>
      %101 = arith.truncf %84 : vector<2x128xf32> to vector<2x128xbf16>
      %cst_52 = arith.constant dense<0.000000e+00> : vector<2x128xf32>
      %102 = tpu.matmul %101, %74, %cst_52 {dimension_numbers = #tpu.dot_dimension_numbers<[1], [0], [0], [1], [0, 0, 1, 1], [], []>} : vector<2x128xbf16>, vector<128x128xbf16>, vector<2x128xf32> -> vector<2x128xf32>
      %103 = arith.truncf %100 : vector<2x128xf32> to vector<2x128xbf16>
      %cst_53 = arith.constant dense<0.000000e+00> : vector<2x128xf32>
      %104 = tpu.matmul %103, %75, %cst_53 {dimension_numbers = #tpu.dot_dimension_numbers<[1], [0], [0], [1], [0, 0, 1, 1], [], []>} : vector<2x128xbf16>, vector<128x128xbf16>, vector<2x128xf32> -> vector<2x128xf32>
      %105 = arith.addf %102, %104 : vector<2x128xf32>
      %106 = vector.broadcast %79 : vector<1x128xf32> to vector<2x128xf32>
      %107 = arith.addf %105, %106 : vector<2x128xf32>
      %cst_54 = arith.constant 0.000000e+00 : f32
      %108 = vector.broadcast %cst_54 : f32 to vector<2x128xf32>
      %109 = arith.maximumf %107, %108 : vector<2x128xf32>
      %110 = arith.truncf %109 : vector<2x128xf32> to vector<2x128xbf16>
      %cst_55 = arith.constant dense<0.000000e+00> : vector<2x128xf32>
      %111 = tpu.matmul %110, %76, %cst_55 {dimension_numbers = #tpu.dot_dimension_numbers<[1], [0], [0], [1], [0, 0, 1, 1], [], []>} : vector<2x128xbf16>, vector<128x128xbf16>, vector<2x128xf32> -> vector<2x128xf32>
      %112 = vector.broadcast %80 : vector<1x128xf32> to vector<2x128xf32>
      %113 = arith.addf %111, %112 : vector<2x128xf32>
      %c0_56 = arith.constant 0 : index
      %c0_57 = arith.constant 0 : index
      %114 = vector.load %arg10[%c0_56, %c0_57] : memref<2x128xf32, #tpu.memory_space<vmem>>, vector<2x128xf32>
      tpu.vector_store %arg10[%c0_56, %c0_57], %113 {strides = array<i32>} : memref<2x128xf32, #tpu.memory_space<vmem>>, vector<2x128xf32>,
    } else {
    }
    return
  }
  func.func @transform_0(%arg0: i32) -> (i32, i32) {
    %c0_i32 = arith.constant 0 : i32
    %c0_i32_0 = arith.constant 0 : i32
    %c0_i32_1 = arith.constant 0 : i32
    return %c0_i32, %c0_i32_0 : i32, i32
  }
  func.func @transform_1(%arg0: i32) -> (i32, i32) {
    %c0_i32 = arith.constant 0 : i32
    %c0_i32_0 = arith.constant 0 : i32
    %c0_i32_1 = arith.constant 0 : i32
    return %c0_i32, %c0_i32_0 : i32, i32
  }
  func.func @transform_2(%arg0: i32) -> (i32, i32) {
    %c0_i32 = arith.constant 0 : i32
    %c0_i32_0 = arith.constant 0 : i32
    %c0_i32_1 = arith.constant 0 : i32
    return %c0_i32, %c0_i32_0 : i32, i32
  }
  func.func @transform_3(%arg0: i32) -> (i32, i32) {
    %c0_i32 = arith.constant 0 : i32
    %c0_i32_0 = arith.constant 0 : i32
    %c0_i32_1 = arith.constant 0 : i32
    return %c0_i32, %c0_i32_0 : i32, i32
  }
  func.func @transform_4(%arg0: i32) -> (i32, i32) {
    %c0_i32 = arith.constant 0 : i32
    %c0_i32_0 = arith.constant 0 : i32
    %c0_i32_1 = arith.constant 0 : i32
    return %c0_i32, %c0_i32_0 : i32, i32
  }
  func.func @transform_5(%arg0: i32) -> (i32, i32) {
    %c0_i32 = arith.constant 0 : i32
    %c0_i32_0 = arith.constant 0 : i32
    %c0_i32_1 = arith.constant 0 : i32
    return %c0_i32, %c0_i32_0 : i32, i32
  }
  func.func @transform_6(%arg0: i32) -> (i32, i32, i32) {
    %c0_i32 = arith.constant 0 : i32
    %c0_i32_0 = arith.constant 0 : i32
    %c0_i32_1 = arith.constant 0 : i32
    return %arg0, %c0_i32, %c0_i32_0 : i32, i32, i32
  }
  func.func @transform_7(%arg0: i32) -> (i32, i32) {
    %c0_i32 = arith.constant 0 : i32
    %c0_i32_0 = arith.constant 0 : i32
    %c0_i32_1 = arith.constant 0 : i32
    return %c0_i32, %c0_i32_0 : i32, i32
  }
  func.func @transform_8(%arg0: i32) -> i32 {
    %c0_i32 = arith.constant 0 : i32
    %c0_i32_0 = arith.constant 0 : i32
    return %c0_i32 : i32
  }
  func.func @transform_9(%arg0: i32) -> (i32, i32) {
    %c0_i32 = arith.constant 0 : i32
    %c0_i32_0 = arith.constant 0 : i32
    %c0_i32_1 = arith.constant 0 : i32
    return %c0_i32, %c0_i32_0 : i32, i32
  }
}

</mosaic_0001>

<bundles_post_ra>
// kernel: gnn_forward.1
= control target key start
LH: loop header
LB: loop body
LE: loop exit
PB: predicated region body
PF: predicated region fallthrough
CT: control target
= control target key end

     0   :  { %14 = vsyncpa [#allocation5], 0  ;;  %s2814_s0 = inlined_call_operand.vmem [shape: f32[16,128], index: 0, kind: input, shape index: {}]   ;;  %s2815_s1 = inlined_call_operand.vmem [shape: bf16[48,16], index: 1, kind: input, shape index: {}]   ;;  %s2816_s2 = inlined_call_operand.vmem [shape: bf16[48,16], index: 2, kind: input, shape index: {}]   ;;  %s2817_s3 = inlined_call_operand.vmem [shape: bf16[16,48], index: 3, kind: input, shape index: {}]   ;;  %s2818_s4 = inlined_call_operand.vmem [shape: bf16[2,16], index: 4, kind: input, shape index: {}]   ;;  %s2819_s5 = inlined_call_operand.vmem [shape: bf16[16,2], index: 5, kind: input, shape index: {}]   ;;  %s2820_s6 = inlined_call_operand.hbm [shape: bf16[4,272,256], index: 6, kind: input, shape index: {}]   ;;  %s2821_s7 = inlined_call_operand.hbm [shape: bf16[400,128], index: 7, kind: input, shape index: {}]   ;;  %s2822_s8 = inlined_call_operand.vmem [shape: f32[4], index: 8, kind: input, shape index: {}]   ;;  %s2823_s9 = inlined_call_operand.hbm [shape: f32[2,128], index: 9, kind: output, shape index: {}]  }
   0x1   :  { %16 = vsyncpa [#allocation5 + $0x1], 0 }
   0x2   :  { %17 = vsyncpa [#allocation9], 0 }
   0x3   :  { %18 = vsyncpa [#allocation7], 0 }
   0x4   :  { %19 = vsyncpa [#allocation6], 0  ;;  %s2415_s30 = smov 0   ;;  %s2417_s10 = smov 0  }
   0x5   :  { %s2419_s11 = smov 0   ;;  %s2421_s12 = smov 0  }
   0x6 LB: > { %s2434_s13 = sadd.s32 4294967295, %s2348_s12   ;;  %p171_p0 = scmp.ne.s32.totalorder %s2340_s10, %s2336_s30  ;;  %s2348_s12 = sphi %s2421_s12, %s2841_s12   ;;  %s2344_s11 = sphi %s2419_s11, %s2840_s11   ;;  %s2340_s10 = sphi %s2417_s10, %s2839_s10   ;;  %s2336_s30 = sphi %s2415_s30, %s2838_s30  }
   0x7   : > { %p2824_p1 = scmp.eq.s32.totalorder %s2434_s13, 0  ;;  %p1712_p2 = scmp.ge.s32.totalorder %s2348_s12, 1 }
   0x8   : > { %p245_p3 = scmp.lt.s32.totalorder %s2348_s12, 5  ;;  %s2350_s16 = smov [#allocation8]  }
   0x9   : > { %p2443_p5 = por %p2824_p1, %p171_p0  ;;  %s275_s17 = sshll.u32 %s2350_s16, 4  ;;  %s276_s17 = int_to_ptr.vmem [resolvable:$true] %s275_s17 }
   0xa   : > { %p2447_p6 = pnand %p1712_p2, %p245_p3  ;;  %s289_s20 = sshll.u32 %s2822_s8, 4  ;;  %s2462_s20 = int_to_ptr.vmem [resolvable:$true] %s289_s20 }
   0xb   : > { %s2827_s14 = scalar_select %p2443_p5, 1, 0 }
   0xc   : > { %s2828_s15 = scalar_select %p2447_p6, 1, 0 }
   0xd   : > { %p2056_p7 = pneg %p2447_p6  ;;  %s2203_s24 = scalar_lea.hbm %s2821_s7, 3200 }
   0xe   : > { %p2204_p9 = scmp.ne.s32.totalorder %s2821_s7, %s2203_s24  ;;  %p2210_p13 = scmp.lt.u32.totalorder %s2203_s24, %s2821_s7 }
   0xf   : > { %p2458_p8 = pnand %p2056_p7, %p2824_p1 }
  0x11   : > { %p2205_p10 = pneg %p2458_p8 }
  0x13   : > { %p2206_p11 = pnand %p2205_p10, %p2204_p9 }
  0x15   : > { %p2207_p12 = pneg %p2206_p11 }
  0x17   : > { %p2212_p0 = pnand %p2210_p13, %p2207_p12 }
  0x19   : > { %2215 = shalt.err (!%p2212_p0)
}
  0x1a   : > { %s2216_s29 = scalar_lea.vmem %s276_s17, 3200  ;;  %p2224_p4 = scmp.lt.s32.totalorder %s276_s17, %s276_s17 }
  0x1b   : > { %p2217_p2 = scmp.ne.s32.totalorder %s276_s17, %s2216_s29  ;;  %p2225_p1 = scmp.lt.s32.totalorder %s2216_s29, %s2216_s29 }
  0x1d   : > { %p2219_p3 = pnand %p2217_p2, %p2205_p10  ;;  %p2226_p5 = por %p2225_p1, %p2224_p4 }
  0x1f   : > { %p2220_p7 = pneg %p2219_p3 }
  0x21   : > { %p2227_p6 = pnand %p2226_p5, %p2220_p7 }
  0x23   : > { %2230 = shalt.err (!%p2227_p6)
}
  0x24   : > { %s2351_s30 = smov 64   ;;  %s2352_s16 = smov 4  }
  0x25   : > { %2059 = dma.hbm_to_vmem [thread:$0]  (!%p2458_p8), %s2821_s7, 3200, %s276_s17, [#allocation9], %s2351_s30, %s2351_s30, %s2352_s16  }
  0x26   : > { %s2231_s22 = scalar_lea.vmem %s2462_s20, 16  ;;  %p2239_p4 = scmp.lt.s32.totalorder %s2462_s20, %s2462_s20 }
  0x27   : > { %p2232_p9 = scmp.ne.s32.totalorder %s2462_s20, %s2231_s22  ;;  %p2240_p5 = scmp.lt.s32.totalorder %s2231_s22, %s2231_s22 }
  0x29   : > { %p2234_p11 = pnand %p2232_p9, %p2205_p10  ;;  %p2241_p6 = por %p2240_p5, %p2239_p4 }
  0x2b   : > { %p2235_p1 = pneg %p2234_p11 }
  0x2d   : > { %p2242_p12 = pnand %p2241_p6, %p2235_p1 }
  0x2f   : > { %2245 = shalt.err (!%p2242_p12)
}
  0x30   : > { %s2353_s23 = smov [#allocation10]   ;;  %s2497_s17 = sadd.s32 1, %s2348_s12  }
  0x31   : > { %2062 = dma.vmem_to_smem (!%p2458_p8), %s2462_s20, 16, %s2353_s23, [#allocation7]  }
  0x32   : > { %s158_s24 = sadd.s32 1, %s2344_s11  ;;  %s155_s25 = ssub.s32 %s2348_s12, %s2497_s17 }
  0x33   : > { %p165_p10 = scmp.ne.s32.totalorder %s2344_s11, %s2340_s10  ;;  %p156_p13 = scmp.eq.s32.totalorder %s155_s25, 0 }
  0x34   : > { %p166_p0 = scmp.eq.s32.totalorder %s2348_s12, 0  ;;  %p2069_p2 = scmp.lt.s32.totalorder %s2348_s12, 4 }
  0x35   : > { %s300_s21 = sand.u32 1, %s2344_s11   ;;  %s2040_s28 = smul.u32 4352, %s2348_s12 }
  0x36   : > { %s2508_s26 = scalar_select %p156_p13, %s2344_s11, %s158_s24  }
  0x37   : > { %p167_p3 = por %p166_p0, %p165_p10  ;;  %s2039_s27 = smul.u32 272, %s300_s21 }
  0x38   : > { %s2518_s16 = scalar_lea.hbm %s2820_s6, %s2040_s28  ;;  %s2522_s12 = scalar_lea.sflag [#allocation5], %s300_s21 }
  0x39   : > { %p2511_p7 = pnand %p2069_p2, %p167_p3  ;;  %s304_s18 = scalar_lea.vmem [#allocation4], %s2039_s27 }
  0x3a   : > { %s311_s19 = sshll.u32 %s304_s18, 4  ;;  %s2246_s22 = scalar_lea.hbm %s2518_s16, 4352  ;;  %s2520_s19 = int_to_ptr.vmem [resolvable:$true] %s311_s19 }
  0x3b   : > { %p2247_p8 = scmp.ne.s32.totalorder %s2518_s16, %s2246_s22  ;;  %p2248_p9 = pneg %p2511_p7 }
  0x3c   : > { %s2251_s25 = scalar_lea.hbm %s2820_s6, 17408  ;;  %p2252_p4 = scmp.lt.u32.totalorder %s2518_s16, %s2820_s6 }
  0x3d   : > { %p2249_p11 = pnand %p2248_p9, %p2247_p8  ;;  %p2253_p5 = scmp.lt.u32.totalorder %s2251_s25, %s2246_s22 }
  0x3e   : > { %p2255_p12 = scmp.lt.u32.totalorder %s2246_s22, %s2518_s16 }
  0x3f   : > { %p2250_p1 = pneg %p2249_p11  ;;  %p2254_p6 = por %p2253_p5, %p2252_p4 }
  0x41   : > { %p2256_p10 = por %p2255_p12, %p2254_p6 }
  0x43   : > { %p2257_p13 = pnand %p2256_p10, %p2250_p1 }
  0x45   : > { %2260 = shalt.err (!%p2257_p13)
}
  0x46   : > { %s2261_s21 = scalar_lea.vmem %s2520_s19, 4352  ;;  %s2354_s27 = smov [#allocation4]  }
  0x47   : > { %p2262_p0 = scmp.ne.s32.totalorder %s2520_s19, %s2261_s21  ;;  %s2266_s30 = sshll.u32 %s2354_s27, 4  ;;  %s2267_s30 = int_to_ptr.vmem [resolvable:$false] %s2266_s30 }
  0x48   : > { %s2268_s18 = scalar_lea.vmem %s2267_s30, 8704  ;;  %p2269_p8 = scmp.lt.s32.totalorder %s2520_s19, %s2267_s30 }
  0x49   : > { %p2264_p2 = pnand %p2262_p0, %p2248_p9  ;;  %p2270_p11 = scmp.lt.s32.totalorder %s2268_s18, %s2261_s21 }
  0x4b   : > { %p2265_p3 = pneg %p2264_p2  ;;  %p2271_p4 = por %p2270_p11, %p2269_p8 }
  0x4d   : > { %p2272_p5 = pnand %p2271_p4, %p2265_p3 }
  0x4f   : > { %2275 = shalt.err (!%p2272_p5)
}
  0x50   : > { %s2355_s22 = smov 128   ;;  %s2356_s23 = smov 8  }
  0x51   : > { %2066 = dma.hbm_to_vmem [thread:$0]  (!%p2511_p7), %s2518_s16, 4352, %s2520_s19, %s2522_s12, %s2355_s22, %s2355_s22, %s2356_s23  }
  0x52   : > { %p2831_p9 = scmp.ne.s32.totalorder %s2828_s15, 0 }
  0x53   : > { %s325_s24 = sand.u32 (!%p2831_p9), 1, %s2340_s10   ;;  %p2832_p1 = scmp.ne.s32.totalorder (!%p2831_p9), %s2827_s14, 0 }
  0x54   : > { %323 = sbr.rel (%p2831_p9) target bundleno = 2366 (0x93e), region = 56  ;;  %s326_s28 = scalar_lea.sflag (!%p2831_p9), [#allocation5], %s325_s24 }
  0x55   : > { %s2041_s25 = smul.u32 (!%p2831_p9), 272, %s325_s24 }
  0x57   : > { %s2553_s20 = scalar_lea.vmem (!%p2831_p9), [#allocation4], %s2041_s25 }
  0x5b   : > { %2319 = dma.done.wait (%p2832_p1), %s326_s28, 4352  }
  0x5c   : > { %2321 = vsyncadd (%p2832_p1), %s326_s28, 4294962944  ;;  %p2833_p6 = scmp.eq.s32.totalorder %s2434_s13, 0 }
  0x5e   : > { %2323 = dma.done.wait (%p2833_p6), [#allocation9], 3200   ;;  %p2834_p7 = pmov %p2833_p6 }
  0x5f   : > { %p2835_p12 = pmov %p2833_p6 }
  0x60   : > { %2325 = vsyncadd (%p2834_p7), [#allocation9], 4294964096 }
  0x61   : > { %2327 = dma.done.wait (%p2835_p12), [#allocation7], 16   ;;  %p2836_p10 = pmov %p2833_p6 }
  0x63   : > { %2329 = vsyncadd (%p2836_p10), [#allocation7], 4294967280 }
  0x64   : > { %342 = sfence }
  0x65   : > { %s2568_s15 = sld [smem:[#allocation10 + %s2434_s13]]  ;;  %p2837_p13 = scmp.ne.s32.totalorder %s2434_s13, 0 }
  0x66   : > { %v374_v0 = vld [vmem:[%s2814_s0] sm:$0xff] (!%p2837_p13)  ;;  %v375_v1 = vld [vmem:[%s2814_s0 + $0x8] sm:$0xff] (!%p2837_p13)  ;;  %vm380_vm0 = vcmask (!%p2837_p13), 123904   ;;  %vm387_vm1 = vcmask (!%p2837_p13), 1024  }
  0x67   : > { %373 = sbr.rel (%p2837_p13) target bundleno = 263 (0x107), region = 72  ;;  %v378_v2 = vld [vmem:[%s2818_s4] sm:$0x1] (!%p2837_p13)  ;;  %376 = vst [vmem:[#allocation2] sm:$0xff] (!%p2837_p13), %v374_v0  ;;  %377 = vst [vmem:[#allocation2 + $0x8] sm:$0xff] (!%p2837_p13), %v375_v1 }
  0x68   : > { %v379_v3 = vunpack.c.l.bf16 (!%p2837_p13), %v378_v2 }
  0x6a   : > { %v381_v4 = vsel (!%p2837_p13), %vm380_vm0, %v379_v3, 0.0 }
  0x6b   : > { %382 = vadd.xlane.f32.xlu0 (!%p2837_p13), %v381_v4 }
  0xf8   : > { %v383_v5 = vpop.xlane.xlu0 %382 }
  0xf9   : > { %v384_v6 = vmax.f32 %v383_v5, 1.0 }
  0xfb   : > { %2120 = vrcp.f32 %v384_v6 }
 0x105   : > { %v2121_v7 = vpop.eup %2120 }
 0x106   : > { %388 = vst.msk [vmem:[#allocation3] sm:$0x3] %vm387_vm1, %v2121_v7 }
 0x107 PF: > { %v2123_v8 = vld [vmem:[%s2553_s20 + $0x4] ss:$8 sps:$4 sm:$0xff]   ;;  %v2125_v9 = vld [vmem:[%s2553_s20] ss:$8 sps:$4 sm:$0xff]   ;;  %v2357_v10 = vmov 0   ;;  %v2358_v28 = vmov 0.0   ;;  %v749_v56 = vlaneseq }
 0x108   : > { %573 = vmatprep.mubr.bf16.mxu0 %v2357_v10  ;;  %2122 = vset.pattern.permute.xlu0 %v2357_v10  ;;  %v2126_v11 = vld [vmem:[%s2553_s20 + $0x14] ss:$8 sps:$4 sm:$0xff]   ;;  %v2128_v12 = vld [vmem:[%s2553_s20 + $0x10] ss:$8 sps:$4 sm:$0xff]   ;;  %v2129_v13 = vld [vmem:[%s2553_s20 + $0x24] ss:$8 sps:$4 sm:$0xff]  }
 0x109   : > { %541 = vmatprep.subr.bf16.mxu0 %v2123_v8  ;;  %v2131_v14 = vld [vmem:[%s2553_s20 + $0x20] ss:$8 sps:$4 sm:$0xff]   ;;  %v2132_v15 = vld [vmem:[%s2553_s20 + $0x34] ss:$8 sps:$4 sm:$0xff]   ;;  %v2134_v16 = vld [vmem:[%s2553_s20 + $0x30] ss:$8 sps:$4 sm:$0xff]   ;;  %1871 = vmatprep.subr.bf16.mxu1 %v2358_v28 }
 0x10a   : > { %542 = vmatpush1.bf16.msra.mxu0 %v2125_v9  ;;  %v2135_v17 = vld [vmem:[%s2553_s20 + $0x44] ss:$8 sps:$4 sm:$0xff]   ;;  %v2137_v18 = vld [vmem:[%s2553_s20 + $0x40] ss:$8 sps:$4 sm:$0xff]   ;;  %v2138_v19 = vld [vmem:[%s2553_s20 + $0x54] ss:$8 sps:$4 sm:$0xff]  }
 0x10b   : > { %543 = vmatprep.subr.bf16.mxu0 %v2126_v11  ;;  %v2140_v20 = vld [vmem:[%s2553_s20 + $0x50] ss:$8 sps:$4 sm:$0xff]   ;;  %v2141_v21 = vld [vmem:[%s2553_s20 + $0x64] ss:$8 sps:$4 sm:$0xff]   ;;  %v2143_v22 = vld [vmem:[%s2553_s20 + $0x60] ss:$8 sps:$4 sm:$0xff]  }
 0x10c   : > { %v2144_v23 = vld [vmem:[%s2553_s20 + $0x74] ss:$8 sps:$4 sm:$0xff]   ;;  %v2146_v24 = vld [vmem:[%s2553_s20 + $0x70] ss:$8 sps:$4 sm:$0xff]   ;;  %vm2359_vm2 = vmmov 0   ;;  %vm601_vm3 = vcmask 130048  }
 0x10d   : > { %v389_v25 = vld [vmem:[#allocation2] sm:$0xff]  ;;  %v390_v26 = vld [vmem:[#allocation2 + $0x8] sm:$0xff]  ;;  %1873 = vmatprep.mubr.msk.bf16.mxu1 %vm2359_vm2, %v2358_v28  ;;  %v2149_v37 = vld [vmem:[%s2815_s1 + $0x10] sm:$0xff]   ;;  %v2658_v57 = vshrl.u32 %v749_v56, 7  ;;  %vm773_vm4 = vcmask 392192   ;;  %vm1117_vm7 = vcmask 1040384  }
 0x10e   : > { %544 = vmatpush1.bf16.msra.mxu0 %v2128_v12  ;;  %v2597_v27 = vpack.c.bf16 %v390_v26, %v389_v25  ;;  %v2147_v35 = vld [vmem:[%s2815_s1] sm:$0xff]   ;;  %v2148_v36 = vld [vmem:[%s2815_s1 + $0x8] sm:$0xff]   ;;  %v2152_v40 = vld [vmem:[%s2816_s2 + $0x10] sm:$0xff]   ;;  %vm1113_vm8 = vcmask 15360   ;;  %p1772_p0 = scmp.ne.s32.totalorder %s2434_s13, 3 }
 0x10f   : > { %545 = vmatprep.subr.bf16.mxu0 %v2129_v13  ;;  %v2150_v38 = vld [vmem:[%s2816_s2] sm:$0xff]   ;;  %v2151_v39 = vld [vmem:[%s2816_s2 + $0x8] sm:$0xff]   ;;  %v2665_v0 = vsub.s32 0, %v2658_v57  ;;  %vm2361_vm9 = vmmov (!%p1772_p0), 0  }
 0x110   : > { %v2155_v41 = vld [vmem:[%s2553_s20 + $0x84] ss:$8 sps:$4 sm:$0xff]   ;;  %v2157_v42 = vld [vmem:[%s2553_s20 + $0x94] ss:$8 sps:$4 sm:$0xff]  }
 0x111   : > { %v2159_v43 = vld [vmem:[%s2553_s20 + $0xa4] ss:$8 sps:$4 sm:$0xff]   ;;  %v2161_v44 = vld [vmem:[%s2553_s20 + $0xb4] ss:$8 sps:$4 sm:$0xff]  }
 0x112   : > { %546 = vmatpush1.bf16.msra.mxu0 %v2131_v14  ;;  %v2163_v45 = vld [vmem:[%s2553_s20 + $0xc4] ss:$8 sps:$4 sm:$0xff]   ;;  %v2165_v46 = vld [vmem:[%s2553_s20 + $0xd4] ss:$8 sps:$4 sm:$0xff]  }
 0x113   : > { %547 = vmatprep.subr.bf16.mxu0 %v2132_v15  ;;  %v2167_v47 = vld [vmem:[%s2553_s20 + $0xe4] ss:$8 sps:$4 sm:$0xff]  }
 0x114   : > { %v2661_v59 = vld [vmem:[%s2553_s20 + $0x100] sm:$0x11] }
 0x115   : > { %v459_v63 = vunpack.c.l.bf16 %v2661_v59  ;;  %v460_v56 = vunpack.c.h.bf16 %v2661_v59 }
 0x116   : > { %548 = vmatpush1.bf16.msra.mxu0 %v2134_v16 }
 0x117   : > { %549 = vmatprep.subr.bf16.mxu0 %v2135_v17  ;;  %v752_v1 = vrot.slane %v459_v63, %v2665_v0  ;;  %v1005_v63 = vstv %s2568_s15 }
 0x11a   : > { %550 = vmatpush1.bf16.msra.mxu0 %v2137_v18 }
 0x11b   : > { %551 = vmatprep.subr.bf16.mxu0 %v2138_v19 }
 0x11e   : > { %552 = vmatpush1.bf16.msra.mxu0 %v2140_v20 }
 0x11f   : > { %553 = vmatprep.subr.bf16.mxu0 %v2141_v21 }
 0x122   : > { %554 = vmatpush1.bf16.msra.mxu0 %v2143_v22 }
 0x123   : > { %555 = vmatprep.subr.bf16.mxu0 %v2144_v23 }
 0x126   : > { %556 = vmatpush1.bf16.msra.mxu0 %v2146_v24 }
 0x127   : > { %1899 = vmatprep.subr.bf16.mxu0 %v2358_v28 }
 0x129   : > { %574 = vmatmul.mubr.bf16.vlgmr.msra.gmra.mrb[0].mxu0 %v2597_v27 }
 0x12a   : > { %1905 = vmatprep.mubr.msk.bf16.mxu0 %vm2359_vm2, %v2358_v28 }
 0x1fc   : > { %v575_v29 = vpop.f32.mrb[0].mxu0 }
 0x1fd   : > { %v577_v30 = vpop.f32.mrb[1].mxu0 }
 0x1fe   : > { %v579_v31 = vpop.f32.mrb[2].mxu0 }
 0x1ff   : > { %v584_v32 = vpack.c.bf16 %v579_v31, %v575_v29  ;;  %v581_v33 = vpop.f32.mrb[3].mxu0 }
 0x200   : > { %v585_v34 = vpack.c.bf16 %v581_v33, %v577_v30 }
 0x202   : > { %1872 = vmatpush3.bf16.msra.mxu1 %v585_v34 }
 0x203   : > { %1885 = vmatprep.subr.bf16.mxu1 %v2358_v28 }
 0x205   : > { %1874 = vmatmul.mubr.msk.bf16.vlgmr.msra.gmra.mrb[0].mxu1 %vm601_vm3, %v2147_v35 }
 0x206   : > { %1886 = vmatpush3.bf16.msra.mxu1 %v584_v32  ;;  %1877 = vmatprep.mubr.msk.bf16.mxu1 %vm2359_vm2, %v2358_v28 }
 0x207   : > { %1909 = vmatprep.subr.bf16.mxu1 %v2358_v28 }
 0x20d   : > { %1878 = vmatmul.mubr.msk.bf16.gmra.mrb[4].mxu1 %vm601_vm3, %v2148_v36 }
 0x20e   : > { %1881 = vmatprep.mubr.msk.bf16.mxu1 %vm2359_vm2, %v2358_v28 }
 0x215   : > { %1882 = vmatmul.mubr.msk.bf16.gmra.mrb[8].mxu1 %vm601_vm3, %v2149_v37  ;;  %v2153_v37 = vld [vmem:[%s2817_s3] sm:$0xff]  }
 0x216   : > { %1887 = vmatprep.mubr.msk.bf16.mxu1 %vm2359_vm2, %v2358_v28 }
 0x21d   : > { %1888 = vmatmul.mubr.msk.bf16.vlgmr.msra.gmra.mrb[12].mxu1 %vm601_vm3, %v2150_v38  ;;  %v2154_v38 = vld [vmem:[%s2553_s20 + $0x80] ss:$8 sps:$4 sm:$0xff]  }
 0x21e   : > { %1891 = vmatprep.mubr.msk.bf16.mxu1 %vm2359_vm2, %v2358_v28  ;;  %1910 = vmatpush3.bf16.msra.mxu1 %v2155_v41  ;;  %v2160_v41 = vld [vmem:[%s2553_s20 + $0xb0] ss:$8 sps:$4 sm:$0xff]  }
 0x21f   : > { %1911 = vmatprep.subr.bf16.mxu1 %v2358_v28 }
 0x222   : > { %1912 = vmatpush3.bf16.msra.mxu1 %v2157_v42  ;;  %v2162_v42 = vld [vmem:[%s2553_s20 + $0xc0] ss:$8 sps:$4 sm:$0xff]  }
 0x223   : > { %1913 = vmatprep.subr.bf16.mxu1 %v2358_v28 }
 0x225   : > { %1892 = vmatmul.mubr.msk.bf16.gmra.mrb[16].mxu1 %vm601_vm3, %v2151_v39  ;;  %v2156_v39 = vld [vmem:[%s2553_s20 + $0x90] ss:$8 sps:$4 sm:$0xff]  }
 0x226   : > { %1895 = vmatprep.mubr.msk.bf16.mxu1 %vm2359_vm2, %v2358_v28  ;;  %1914 = vmatpush3.bf16.msra.mxu1 %v2159_v43  ;;  %v2164_v43 = vld [vmem:[%s2553_s20 + $0xd0] ss:$8 sps:$4 sm:$0xff]  }
 0x227   : > { %1915 = vmatprep.subr.bf16.mxu1 %v2358_v28 }
 0x22a   : > { %1916 = vmatpush3.bf16.msra.mxu1 %v2161_v44  ;;  %v2166_v44 = vld [vmem:[%s2553_s20 + $0xe0] ss:$8 sps:$4 sm:$0xff]  }
 0x22b   : > { %1917 = vmatprep.subr.bf16.mxu1 %v2358_v28 }
 0x22d   : > { %1896 = vmatmul.mubr.msk.bf16.gmra.mrb[20].mxu1 %vm601_vm3, %v2152_v40  ;;  %v2158_v40 = vld [vmem:[%s2553_s20 + $0xa0] ss:$8 sps:$4 sm:$0xff]  }
 0x22e   : > { %1925 = vmatprep.mubr.msk.bf16.mxu1 %vm2359_vm2, %v2358_v28  ;;  %1918 = vmatpush3.bf16.msra.mxu1 %v2163_v45  ;;  %v2168_v45 = vld [vmem:[%s2553_s20 + $0xf0] ss:$8 sps:$4 sm:$0xff]  }
 0x22f   : > { %1919 = vmatprep.subr.bf16.mxu1 %v2358_v28 }
 0x232   : > { %1920 = vmatpush3.bf16.msra.mxu1 %v2165_v46  ;;  %v2169_v46 = vld [vmem:[%s2553_s20 + $0xf4] ss:$8 sps:$4 sm:$0xff]  }
 0x233   : > { %1921 = vmatprep.subr.bf16.mxu1 %v2358_v28 }
 0x236   : > { %1922 = vmatpush3.bf16.msra.mxu1 %v2167_v47 }
 0x237   : > { %1923 = vmatprep.subr.bf16.mxu1 %v2358_v28 }
 0x23a   : > { %1924 = vmatpush3.bf16.msra.mxu1 %v2169_v46 }
 0x23b   : > { %1949 = vmatprep.subr.bf16.mxu1 %v2358_v28 }
 0x2d8   : > { %v645_v48 = vpop.f32.mrb[0].mxu1 }
 0x2d9   : > { %v1875_v49 = vpop.f32.mrb[1].mxu1 }
 0x2da   : > { %v648_v50 = vpop.f32.mrb[2].mxu1 }
 0x2db   : > { %v1876_v51 = vpop.f32.mrb[3].mxu1 }
 0x2e0   : > { %v653_v52 = vpop.f32.mrb[4].mxu1 }
 0x2e1   : > { %v1879_v53 = vpop.f32.mrb[5].mxu1 }
 0x2e2   : > { %v656_v54 = vpop.f32.mrb[6].mxu1 }
 0x2e3   : > { %v1880_v55 = vpop.f32.mrb[7].mxu1 }
 0x2e4   : > { %v392_v55 = vld [vmem:[#allocation3] sm:$0x3] }
 0x2e5   : > { %1099 = vperm.xlu0 %2122, %v392_v55   ;;  %v2180_v55 = vld [vmem:[#allocation8 + $0x48] sm:$0xff] (!%p1772_p0)  }
 0x2e8   : > { %v661_v58 = vpop.f32.mrb[8].mxu1 }
 0x2e9   : > { %v1883_v60 = vpop.f32.mrb[9].mxu1 }
 0x2ea   : > { %v664_v61 = vpop.f32.mrb[10].mxu1 }
 0x2eb   : > { %v1884_v62 = vpop.f32.mrb[11].mxu1 }
 0x2f0   : > { %v726_v2 = vpop.f32.mrb[12].mxu1 }
 0x2f1   : > { %v727_v3 = vadd.f32 %v726_v2, %v645_v48  ;;  %v1889_v4 = vpop.f32.mrb[13].mxu1 }
 0x2f2   : > { %v729_v5 = vpop.f32.mrb[14].mxu1 }
 0x2f3   : > { %v753_v6 = vadd.f32 %v752_v1, %v727_v3  ;;  %v730_v7 = vadd.f32 %v729_v5, %v648_v50  ;;  %v1890_v8 = vpop.f32.mrb[15].mxu1 }
 0x2f5   : > { %v754_v9 = vadd.f32 %v752_v1, %v730_v7  ;;  %v759_v10 = vmax.f32 %v753_v6, 0.0 }
 0x2f7   : > { %v760_v11 = vmax.f32 %v754_v9, 0.0 }
 0x2f8   : > { %v734_v12 = vpop.f32.mrb[16].mxu1 }
 0x2f9   : > { %v765_v13 = vpack.c.bf16 %v760_v11, %v759_v10  ;;  %v735_v14 = vadd.f32 %v734_v12, %v653_v52  ;;  %v1893_v15 = vpop.f32.mrb[17].mxu1  ;;  %v2705_v12 = vld [vmem:[%s2818_s4] sm:$0x1] }
 0x2fa   : > { %v737_v16 = vpop.f32.mrb[18].mxu1 }
 0x2fb   : > { %v755_v17 = vadd.f32 %v752_v1, %v735_v14  ;;  %v738_v18 = vadd.f32 %v737_v16, %v656_v54  ;;  %v1894_v19 = vpop.f32.mrb[19].mxu1  ;;  %1900 = vmatpush3.bf16.msra.mxu0 %v765_v13 }
 0x2fc   : > { %1901 = vmatprep.subr.bf16.mxu0 %v2358_v28  ;;  %v408_v19 = vld [vmem:[%s2819_s5] sm:$0xff]  }
 0x2fd   : > { %v756_v20 = vadd.f32 %v752_v1, %v738_v18  ;;  %v761_v21 = vmax.f32 %v755_v17, 0.0 }
 0x2ff   : > { %v762_v22 = vmax.f32 %v756_v20, 0.0 }
 0x300   : > { %v742_v23 = vpop.f32.mrb[20].mxu1 }
 0x301   : > { %v766_v24 = vpack.c.bf16 %v762_v22, %v761_v21  ;;  %v743_v25 = vadd.f32 %v742_v23, %v661_v58  ;;  %v1897_v26 = vpop.f32.mrb[21].mxu1  ;;  %v1000_v58 = vrot.slane %v460_v56, %v2665_v0  ;;  %v2363_v56 = vmov (!%p1772_p0), 0  }
 0x302   : > { %v745_v29 = vpop.f32.mrb[22].mxu1  ;;  %2176 = vset.pattern.permute.xlu0 (!%p1772_p0), %v2363_v56  ;;  %v1267_v56 = vld [vmem:[#allocation8 + $0xc0] sm:$0x1] (!%p1772_p0) }
 0x303   : > { %v757_v30 = vadd.f32 %v752_v1, %v743_v25  ;;  %v746_v31 = vadd.f32 %v745_v29, %v664_v61  ;;  %v1898_v32 = vpop.f32.mrb[23].mxu1  ;;  %1902 = vmatpush3.bf16.msra.mxu0 %v766_v24 }
 0x304   : > { %1903 = vmatprep.subr.bf16.mxu0 %v2358_v28 }
 0x305   : > { %v758_v33 = vadd.f32 %v752_v1, %v746_v31  ;;  %v763_v34 = vmax.f32 %v757_v30, 0.0 }
 0x307   : > { %v764_v35 = vmax.f32 %v758_v33, 0.0 }
 0x309   : > { %v767_v36 = vpack.c.bf16 %v764_v35, %v763_v34 }
 0x30b   : > { %1904 = vmatpush3.bf16.msra.mxu0 %v767_v36 }
 0x30c   : > { %1929 = vmatprep.subr.bf16.mxu0 %v2358_v28 }
 0x30e   : > { %1906 = vmatmul.mubr.msk.bf16.vlgmr.msra.gmra.mrb[4].mxu0 %vm773_vm4, %v2153_v37 }
 0x30f   : > { %1930 = vmatpush3.bf16.msra.mxu0 %v2154_v38  ;;  %1945 = vmatprep.mubr.msk.bf16.mxu0 %vm2359_vm2, %v2358_v28 }
 0x310   : > { %1931 = vmatprep.subr.bf16.mxu0 %v2358_v28 }
 0x313   : > { %1932 = vmatpush3.bf16.msra.mxu0 %v2156_v39 }
 0x314   : > { %1933 = vmatprep.subr.bf16.mxu0 %v2358_v28 }
 0x317   : > { %1934 = vmatpush3.bf16.msra.mxu0 %v2158_v40 }
 0x318   : > { %1935 = vmatprep.subr.bf16.mxu0 %v2358_v28 }
 0x31b   : > { %1936 = vmatpush3.bf16.msra.mxu0 %v2160_v41 }
 0x31c   : > { %1937 = vmatprep.subr.bf16.mxu0 %v2358_v28 }
 0x31f   : > { %1938 = vmatpush3.bf16.msra.mxu0 %v2162_v42 }
 0x320   : > { %1939 = vmatprep.subr.bf16.mxu0 %v2358_v28 }
 0x323   : > { %1940 = vmatpush3.bf16.msra.mxu0 %v2164_v43 }
 0x324   : > { %1941 = vmatprep.subr.bf16.mxu0 %v2358_v28 }
 0x327   : > { %1942 = vmatpush3.bf16.msra.mxu0 %v2166_v44 }
 0x328   : > { %1943 = vmatprep.subr.bf16.mxu0 %v2358_v28 }
 0x32b   : > { %1944 = vmatpush3.bf16.msra.mxu0 %v2168_v45 }
 0x32c   : > { %1961 = vmatprep.subr.bf16.mxu0 %v2358_v28 }
 0x32e   : > { %1946 = vmatmul.mubr.bf16.vlgmr.msra.gmra.mrb[8].mxu0 %v2597_v27 }
 0x32f   : > { %1963 = vmatprep.mubr.msk.bf16.mxu0 %vm2359_vm2, %v2358_v28 }
 0x364   : > { %v2717_v14 = vpop.permute.xlu0 %1099 }
 0x3e1   : > { %v811_v47 = vpop.f32.mrb[4].mxu0 }
 0x3e2   : > { %v1907_v48 = vpop.f32.mrb[5].mxu0 }
 0x3e3   : > { %v814_v49 = vpop.f32.mrb[6].mxu0 }
 0x3e4   : > { %v818_v50 = vpack.c.bf16 %v814_v49, %v811_v47  ;;  %v1908_v51 = vpop.f32.mrb[7].mxu0 }
 0x3e5   : > { %v2179_v51 = vld [vmem:[#allocation8 + $0x40] sm:$0xff] (!%p1772_p0)  }
 0x3e6   : > { %1926 = vmatmul.mubr.bf16.vlgmr.msra.gmra.mrb[24].mxu1 %v818_v50 }
 0x3e7   : > { %1951 = vmatprep.mubr.msk.bf16.mxu1 %vm2359_vm2, %v2358_v28 }
 0x401   : > { %v990_v52 = vpop.f32.mrb[8].mxu0 }
 0x402   : > { %v1947_v53 = vpop.f32.mrb[9].mxu0 }
 0x403   : > { %v993_v27 = vpop.f32.mrb[10].mxu0  ;;  %v1311_v53 = vunpack.c.l.bf16 (!%p1772_p0), %v408_v19 }
 0x404   : > { %v1948_v54 = vpop.f32.mrb[11].mxu0 }
 0x405   : > { %v2362_v54 = vmov (!%p1772_p0), 1  }
 0x406   : > { %2177 = vset.pattern.permute.xlu1 (!%p1772_p0), %v2362_v54 }
 0x4b9   : > { %v901_v60 = vpop.f32.mrb[24].mxu1 }
 0x4ba   : > { %v991_v61 = vadd.f32 %v990_v52, %v901_v60  ;;  %v1927_v62 = vpop.f32.mrb[25].mxu1  ;;  %v2360_v52 = vmov (!%p1772_p0), 0.0  }
 0x4bb   : > { %v904_v1 = vpop.f32.mrb[26].mxu1 }
 0x4bc   : > { %v1001_v2 = vadd.f32 %v1000_v58, %v991_v61  ;;  %v994_v3 = vadd.f32 %v993_v27, %v904_v1  ;;  %v1928_v4 = vpop.f32.mrb[27].mxu1  ;;  %v1312_v27 = vunpack.c.h.bf16 (!%p1772_p0), %v408_v19  ;;  %v2182_v1 = vld [vmem:[#allocation8 + $0x58] sm:$0xff] (!%p1772_p0)  }
 0x4bd   : > { %v2185_v4 = vld [vmem:[#allocation8 + $0x8] sm:$0xff] (!%p1772_p0)  }
 0x4be   : > { %v1006_v5 = vmul.f32 %v1005_v63, %v1001_v2  ;;  %v1002_v6 = vadd.f32 %v1000_v58, %v994_v3  ;;  %vm1003_vm5 = vcmp.ge.f32.partialorder %v1001_v2, 0.0  ;;  %v1774_v58 = vadd.f32 (!%p1772_p0), -1.0, %v1311_v53  ;;  %v2184_v3 = vld [vmem:[#allocation8 + $0x60] sm:$0xff] (!%p1772_p0)  }
 0x4bf   : > { %v1775_v60 = vadd.f32 (!%p1772_p0), -1.0, %v1312_v27 }
 0x4c0   : > { %vm1004_vm6 = vcmp.ge.f32.partialorder %v1002_v6, 0.0  ;;  %v1007_v7 = vmul.f32 %v1005_v63, %v1002_v6  ;;  %v1008_v8 = vsel %vm1003_vm5, %v1001_v2, %v1006_v5  ;;  %v1315_v61 = vmul.f32 (!%p1772_p0), 1e+30, %v1774_v58  ;;  %v2181_v63 = vld [vmem:[#allocation8 + $0x50] sm:$0xff] (!%p1772_p0)   ;;  %v2183_v2 = vld [vmem:[#allocation8] sm:$0xff] (!%p1772_p0)   ;;  %v2186_v5 = vld [vmem:[#allocation8 + $0x68] sm:$0xff] (!%p1772_p0)  }
 0x4c1   : > { %v1054_v59 = vmul.f32 %v1008_v8, %v1008_v8  ;;  %v1316_v62 = vmul.f32 (!%p1772_p0), 1e+30, %v1775_v60  ;;  %v1268_v58 = vunpack.c.l.bf16 (!%p1772_p0), %v1267_v56 }
 0x4c2   : > { %v1009_v9 = vsel %vm1004_vm6, %v1002_v6, %v1007_v7  ;;  %1337 = vperm.xlu1 (!%p1772_p0), %2177, %v1315_v61   ;;  %1319 = vperm.xlu0 (!%p1772_p0), %2176, %v1315_v61   ;;  %v2187_v6 = vld [vmem:[#allocation8 + $0x10] sm:$0xff] (!%p1772_p0)  }
 0x4c3   : > { %v1055_v10 = vmul.f32 %v1009_v9, %v1009_v9  ;;  %v1010_v11 = vpack.c.bf16 %v1009_v9, %v1008_v8  ;;  %v2188_v7 = vld [vmem:[#allocation8 + $0x70] sm:$0xff] (!%p1772_p0)   ;;  %v1535_v60 = vrot.slane (!%p1772_p0), %v1268_v58, %v2665_v0 }
 0x4c5   : > { %1950 = vmatpush3.bf16.msra.mxu1 %v1010_v11  ;;  %v1056_v13 = vpack.c.bf16 %v1055_v10, %v1054_v59  ;;  %v2191_v10 = vld [vmem:[#allocation8 + $0x20] sm:$0xff] (!%p1772_p0)   ;;  %v2192_v11 = vld [vmem:[#allocation8 + $0x28] sm:$0xff] (!%p1772_p0)   ;;  %v2193_v59 = vld [vmem:[#allocation8 + $0x30] sm:$0xff] (!%p1772_p0)  }
 0x4c6   : > { %1955 = vmatprep.subr.bf16.mxu1 %v2358_v28  ;;  %1341 = vperm.xlu1 (!%p1772_p0), %2177, %v1316_v62  }
 0x4c7   : > { %1324 = vperm.xlu0 (!%p1772_p0), %2176, %v1316_v62  }
 0x4c8   : > { %1952 = vmatmul.mubr.msk.bf16.vlgmr.msra.gmra.mrb[28].mxu1 %vm601_vm3, %v2705_v12 }
 0x4c9   : > { %1956 = vmatpush3.bf16.msra.mxu1 %v1056_v13  ;;  %1957 = vmatprep.mubr.msk.bf16.mxu1 %vm2359_vm2, %v2358_v28 }
 0x4ca   : > { %1967 = vmatprep.subr.bf16.mxu1 %v2358_v28 }
 0x4cb   : > { %2178 = vset.pattern.permute.xlu0 (!%p1772_p0), %v2362_v54 }
 0x4d0   : > { %1958 = vmatmul.mubr.msk.bf16.vlgmr.msra.gmra.mrb[32].mxu1 %vm601_vm3, %v2705_v12 }
 0x4d1   : > { %1969 = vmatprep.mubr.msk.bf16.mxu1 %vm2359_vm2, %v2358_v28 }
 0x541   : > { %v1338_v13 = vpop.permute.xlu1 (!%p1772_p0), %1337 }
 0x59b   : > { %v1048_v15 = vpop.f32.mrb[28].mxu1 }
 0x59c   : > { %v1102_v16 = vmul.f32 %v2717_v14, %v1048_v15  ;;  %v1953_v17 = vpop.f32.mrb[29].mxu1  ;;  %v1320_v15 = vpop.permute.xlu0 (!%p1772_p0), %1319 }
 0x59d   : > { %v1051_v18 = vpop.f32.mrb[30].mxu1 }
 0x59e   : > { %v1107_v20 = vpack.c.bf16 %v1102_v16, %v1102_v16  ;;  %v1954_v21 = vpop.f32.mrb[31].mxu1  ;;  %v1104_v28 = vmul.f32 %v1102_v16, %v1102_v16  ;;  %v1342_v18 = vpop.permute.xlu1 (!%p1772_p0), %1341 }
 0x5a0   : > { %v1119_v22 = vsel %vm1117_vm7, %v1107_v20, 0 }
 0x5a1   : > { %1962 = vmatpush3.bf16.msra.mxu0 %v1119_v22 }
 0x5a2   : > { %1973 = vmatprep.subr.bf16.mxu0 (!%p1772_p0), %v2360_v52 }
 0x5a3   : > { %v1091_v23 = vpop.f32.mrb[32].mxu1 }
 0x5a4   : > { %v1103_v24 = vmul.f32 %v2717_v14, %v1091_v23  ;;  %v1959_v25 = vpop.f32.mrb[33].mxu1  ;;  %1964 = vmatmul.mubr.msk.bf16.vlgmr.msra.gmra.mrb[12].mxu0 %vm1113_vm8, %v408_v19 }
 0x5a5   : > { %v1094_v26 = vpop.f32.mrb[34].mxu1  ;;  %1975 = vmatprep.mubr.msk.bf16.mxu0 (!%p1772_p0), %vm2361_vm9, %v2360_v52 }
 0x5a6   : > { %v1105_v29 = vsub.f32 %v1103_v24, %v1104_v28  ;;  %v1960_v30 = vpop.f32.mrb[35].mxu1 }
 0x5a8   : > { %v1106_v31 = vmax.f32 %v1105_v29, 0.0 }
 0x5aa   : > { %v1162_v32 = vpack.c.bf16 %v1106_v31, %v1106_v31 }
 0x5ac   : > { %v1166_v33 = vsel %vm1117_vm7, %v1162_v32, 0 }
 0x5ad   : > { %1968 = vmatpush3.bf16.msra.mxu1 %v1166_v33 }
 0x5ae   : > { %1979 = vmatprep.subr.bf16.mxu1 (!%p1772_p0), %v2360_v52 }
 0x5b0   : > { %1970 = vmatmul.mubr.msk.bf16.vlgmr.msra.gmra.mrb[36].mxu1 %vm1113_vm8, %v408_v19  ;;  %v1325_v19 = vpop.permute.xlu0 (!%p1772_p0), %1324 }
 0x5b1   : > { %1980 = vmatpush3.bf16.msra.mxu1 (!%p1772_p0), %v2179_v51  ;;  %1995 = vmatprep.mubr.msk.bf16.mxu1 (!%p1772_p0), %vm2361_vm9, %v2360_v52  ;;  %v2201_v51 = vld [vmem:[#allocation8 + $0xb0] sm:$0xff] (!%p1772_p0)  }
 0x5b2   : > { %1981 = vmatprep.subr.bf16.mxu1 (!%p1772_p0), %v2360_v52 }
 0x5b5   : > { %1982 = vmatpush3.bf16.msra.mxu1 (!%p1772_p0), %v2180_v55 }
 0x5b6   : > { %1983 = vmatprep.subr.bf16.mxu1 (!%p1772_p0), %v2360_v52 }
 0x5b9   : > { %1984 = vmatpush3.bf16.msra.mxu1 (!%p1772_p0), %v2181_v63 }
 0x5ba   : > { %1985 = vmatprep.subr.bf16.mxu1 (!%p1772_p0), %v2360_v52 }
 0x5bd   : > { %1986 = vmatpush3.bf16.msra.mxu1 (!%p1772_p0), %v2182_v1 }
 0x5be   : > { %1987 = vmatprep.subr.bf16.mxu1 (!%p1772_p0), %v2360_v52 }
 0x5c1   : > { %1988 = vmatpush3.bf16.msra.mxu1 (!%p1772_p0), %v2184_v3 }
 0x5c2   : > { %1989 = vmatprep.subr.bf16.mxu1 (!%p1772_p0), %v2360_v52 }
 0x5c5   : > { %1990 = vmatpush3.bf16.msra.mxu1 (!%p1772_p0), %v2186_v5 }
 0x5c6   : > { %1991 = vmatprep.subr.bf16.mxu1 (!%p1772_p0), %v2360_v52 }
 0x5c9   : > { %1992 = vmatpush3.bf16.msra.mxu1 (!%p1772_p0), %v2188_v7 }
 0x5ca   : > { %1993 = vmatprep.subr.bf16.mxu1 (!%p1772_p0), %v2360_v52 }
 0x677   : > { %v1155_v34 = vpop.f32.mrb[12].mxu0 }
 0x678   : > { %v1965_v35 = vpop.f32.mrb[13].mxu0  ;;  %v1163_v44 = vsub.f32 %v1008_v8, %v1155_v34  ;;  %v2189_v8 = vld [vmem:[#allocation8 + $0x18] sm:$0xff] (!%p1772_p0)  }
 0x679   : > { %v1158_v36 = vpop.f32.mrb[14].mxu0 }
 0x67a   : > { %v1966_v37 = vpop.f32.mrb[15].mxu0  ;;  %v1164_v46 = vsub.f32 %v1009_v9, %v1158_v36  ;;  %v2190_v9 = vld [vmem:[#allocation8 + $0x78] sm:$0xff] (!%p1772_p0)  }
 0x67b   : > { %1994 = vmatpush3.bf16.msra.mxu1 (!%p1772_p0), %v2190_v9 }
 0x67c   : > { %2019 = vmatprep.subr.bf16.mxu1 (!%p1772_p0), %v2360_v52 }
 0x683   : > { %v1202_v38 = vpop.f32.mrb[36].mxu1 }
 0x684   : > { %v1203_v39 = vadd.f32 1e-05, %v1202_v38  ;;  %v1971_v40 = vpop.f32.mrb[37].mxu1  ;;  %v2195_v38 = vld [vmem:[#allocation8 + $0x80] sm:$0xff] (!%p1772_p0)  }
 0x685   : > { %v1205_v41 = vpop.f32.mrb[38].mxu1  ;;  %v2196_v40 = vld [vmem:[#allocation8 + $0x88] sm:$0xff] (!%p1772_p0)  }
 0x686   : > { %2172 = vrsqrt.f32 %v1203_v39  ;;  %v1206_v42 = vadd.f32 1e-05, %v1205_v41  ;;  %v1972_v43 = vpop.f32.mrb[39].mxu1  ;;  %v2197_v41 = vld [vmem:[#allocation8 + $0x90] sm:$0xff] (!%p1772_p0)  }
 0x688   : > { %2174 = vrsqrt.f32 %v1206_v42 }
 0x68f   : > { %1218 = sbr.rel (%p1772_p0) target bundleno = 2341 (0x925), region = 76 }
 0x690   : > { %v2173_v45 = vpop.eup %2172 }
 0x691   : > { %v2726_v47 = vmul.f32 %v2173_v45, %v1163_v44 }
 0x692   : > { %v2175_v48 = vpop.eup %2174 }
 0x693   : > { %1213 = vst [vmem:[#allocation2] sm:$0xff] %v2726_v47  ;;  %v2729_v49 = vmul.f32 %v2175_v48, %v1164_v46  ;;  %v1344_v16 = vadd.f32 (!%p1772_p0), %v1338_v13, %v2726_v47  ;;  %v1327_v17 = vadd.f32 (!%p1772_p0), %v1320_v15, %v2726_v47  ;;  %v2198_v48 = vld [vmem:[#allocation8 + $0x98] sm:$0xff] (!%p1772_p0)  }
 0x695   : > { %1214 = vst [vmem:[#allocation2 + $0x8] sm:$0xff] %v2729_v49  ;;  %v1269_v50 = vpack.c.bf16 (!%p1772_p0), %v2729_v49, %v2726_v47  ;;  %v1345_v20 = vadd.f32 (!%p1772_p0), %v1342_v18, %v2729_v49  ;;  %v1328_v21 = vadd.f32 (!%p1772_p0), %v1325_v19, %v2729_v49  ;;  %v2199_v49 = vld [vmem:[#allocation8 + $0xa0] sm:$0xff] (!%p1772_p0)  }
 0x697   : > { %1974 = vmatpush3.bf16.msra.mxu0 %v1269_v50  ;;  %v1346_v22 = vmax.f32 %v1344_v16, %v1345_v20  ;;  %v1329_v23 = vmax.f32 %v1327_v17, %v1328_v21  ;;  %v2200_v50 = vld [vmem:[#allocation8 + $0xa8] sm:$0xff]  }
 0x698   : > { %1999 = vmatprep.subr.bf16.mxu0 %v2360_v52 }
 0x699   : > { %v1347_v28 = vrot.slane %v1346_v22, 4  ;;  %v1330_v24 = vrot.slane %v1329_v23, 4 }
 0x69a   : > { %1976 = vmatmul.mubr.msk.bf16.vlgmr.msra.gmra.mrb[0].mxu0 %vm601_vm3, %v2705_v12  ;;  %v2194_v12 = vld [vmem:[#allocation8 + $0x38] sm:$0xff]  }
 0x69b   : > { %2015 = vmatprep.mubr.msk.bf16.mxu0 %vm2361_vm9, %v2360_v52  ;;  %2000 = vmatpush3.bf16.msra.mxu0 %v2183_v2  ;;  %v1348_v25 = vmax.f32 %v1346_v22, %v1347_v28  ;;  %v1331_v26 = vmax.f32 %v1329_v23, %v1330_v24 }
 0x69c   : > { %2001 = vmatprep.subr.bf16.mxu0 %v2360_v52 }
 0x69d   : > { %v1349_v29 = vrot.slane %v1348_v25, 2  ;;  %v1332_v30 = vrot.slane %v1331_v26, 2 }
 0x69f   : > { %2002 = vmatpush3.bf16.msra.mxu0 %v2185_v4  ;;  %v1350_v31 = vmax.f32 %v1348_v25, %v1349_v29  ;;  %v1333_v32 = vmax.f32 %v1331_v26, %v1332_v30 }
 0x6a0   : > { %2003 = vmatprep.subr.bf16.mxu0 %v2360_v52 }
 0x6a1   : > { %v1351_v33 = vrot.slane %v1350_v31, 1  ;;  %v1334_v34 = vrot.slane %v1333_v32, 1 }
 0x6a3   : > { %2004 = vmatpush3.bf16.msra.mxu0 %v2187_v6  ;;  %v1335_v35 = vmax.f32 %v1333_v32, %v1334_v34  ;;  %v1352_v36 = vmax.f32 %v1350_v31, %v1351_v33 }
 0x6a4   : > { %2005 = vmatprep.subr.bf16.mxu0 %v2360_v52 }
 0x6a5   : > { %v1353_v37 = vsel %vm1117_vm7, %v1335_v35, %v1352_v36 }
 0x6a6   : > { %v1355_v39 = vpack.c.bf16 %v1353_v37, %v1353_v37 }
 0x6a7   : > { %2006 = vmatpush3.bf16.msra.mxu0 %v2189_v8 }
 0x6a8   : > { %2007 = vmatprep.subr.bf16.mxu0 %v2360_v52  ;;  %1996 = vmatmul.mubr.bf16.vlgmr.msra.gmra.mrb[0].mxu1 %v1355_v39 }
 0x6a9   : > { %2020 = vmatpush3.bf16.msra.mxu1 %v2195_v38  ;;  %2035 = vmatprep.mubr.msk.bf16.mxu1 %vm2361_vm9, %v2360_v52 }
 0x6aa   : > { %2021 = vmatprep.subr.bf16.mxu1 %v2360_v52 }
 0x6ab   : > { %2008 = vmatpush3.bf16.msra.mxu0 %v2191_v10 }
 0x6ac   : > { %2009 = vmatprep.subr.bf16.mxu0 %v2360_v52 }
 0x6ad   : > { %2022 = vmatpush3.bf16.msra.mxu1 %v2196_v40 }
 0x6ae   : > { %2023 = vmatprep.subr.bf16.mxu1 %v2360_v52 }
 0x6af   : > { %2010 = vmatpush3.bf16.msra.mxu0 %v2192_v11 }
 0x6b0   : > { %2011 = vmatprep.subr.bf16.mxu0 %v2360_v52 }
 0x6b1   : > { %2024 = vmatpush3.bf16.msra.mxu1 %v2197_v41 }
 0x6b2   : > { %2025 = vmatprep.subr.bf16.mxu1 %v2360_v52 }
 0x6b3   : > { %2012 = vmatpush3.bf16.msra.mxu0 %v2193_v59 }
 0x6b4   : > { %2013 = vmatprep.subr.bf16.mxu0 %v2360_v52 }
 0x6b5   : > { %2026 = vmatpush3.bf16.msra.mxu1 %v2198_v48 }
 0x6b6   : > { %2027 = vmatprep.subr.bf16.mxu1 %v2360_v52 }
 0x6b7   : > { %2014 = vmatpush3.bf16.msra.mxu0 %v2194_v12 }
 0x6b9   : > { %2028 = vmatpush3.bf16.msra.mxu1 %v2199_v49 }
 0x6ba   : > { %2029 = vmatprep.subr.bf16.mxu1 %v2360_v52 }
 0x6bd   : > { %2030 = vmatpush3.bf16.msra.mxu1 %v2200_v50 }
 0x6be   : > { %2031 = vmatprep.subr.bf16.mxu1 %v2360_v52 }
 0x6c1   : > { %2032 = vmatpush3.bf16.msra.mxu1 %v2201_v51 }
 0x6c2   : > { %2033 = vmatprep.subr.bf16.mxu1 %v2360_v52  ;;  %v1541_v52 = vsub.s32 1, %v2658_v57 }
 0x6c4   : > { %v1542_v6 = vrot.slane %v1268_v58, %v1541_v52 }
 0x76d   : > { %v1304_v42 = vpop.f32.mrb[0].mxu0 }
 0x76e   : > { %v1310_v43 = vmul.f32 %v1304_v42, %v2717_v14  ;;  %v1977_v44 = vpop.f32.mrb[1].mxu0  ;;  %v2202_v14 = vld [vmem:[#allocation8 + $0xb8] sm:$0xff]  }
 0x76f   : > { %v1307_v45 = vpop.f32.mrb[2].mxu0  ;;  %2034 = vmatpush3.bf16.msra.mxu1 %v2202_v14 }
 0x770   : > { %v1354_v46 = vpack.c.bf16 %v1310_v43, %v1310_v43  ;;  %v1978_v47 = vpop.f32.mrb[3].mxu0 }
 0x772   : > { %2016 = vmatmul.mubr.bf16.vlgmr.msra.gmra.mrb[4].mxu0 %v1354_v46 }
 0x77b   : > { %v1438_v53 = vpop.f32.mrb[0].mxu1 }
 0x77c   : > { %v1997_v27 = vpop.f32.mrb[1].mxu1 }
 0x77d   : > { %v1441_v54 = vpop.f32.mrb[2].mxu1 }
 0x77e   : > { %v1998_v55 = vpop.f32.mrb[3].mxu1 }
 0x845   : > { %v1526_v61 = vpop.f32.mrb[4].mxu0 }
 0x846   : > { %v1527_v62 = vadd.f32 %v1526_v61, %v1438_v53  ;;  %v2017_v63 = vpop.f32.mrb[5].mxu0 }
 0x847   : > { %v1529_v1 = vpop.f32.mrb[6].mxu0 }
 0x848   : > { %v1536_v2 = vadd.f32 %v1535_v60, %v1527_v62  ;;  %v2018_v3 = vpop.f32.mrb[7].mxu0 }
 0x84a   : > { %v1537_v4 = vmax.f32 %v1536_v2, 0.0 }
 0x84c   : > { %v1538_v5 = vpack.c.bf16 %v1537_v4, %v1537_v4 }
 0x84e   : > { %2036 = vmatmul.mubr.bf16.vlgmr.msra.gmra.mrb[4].mxu1 %v1538_v5 }
 0x921   : > { %v1625_v7 = vpop.f32.mrb[4].mxu1 }
 0x922   : > { %v1626_v8 = vadd.f32 %v1625_v7, %v1542_v6  ;;  %v2037_v9 = vpop.f32.mrb[5].mxu1 }
 0x923   : > { %v1628_v10 = vpop.f32.mrb[6].mxu1 }
 0x924   : > { %1631 = vst [vmem:[#allocation11] sm:$0x3] %v1626_v8  ;;  %v2038_v11 = vpop.f32.mrb[7].mxu1 }
 0x925 PF: > { %p2072_p2 = scmp.eq.s32.totalorder %s2434_s13, 3  ;;  %s2364_s18 = smov [#allocation11]  }
 0x926   : > { %s1639_s22 = sshll.u32 %s2364_s18, 4  ;;  %s1640_s22 = int_to_ptr.vmem [resolvable:$true] %s1639_s22 }
 0x927   : > { %s2276_s23 = scalar_lea.vmem %s1640_s22, 32  ;;  %p2283_p4 = scmp.lt.s32.totalorder %s1640_s22, %s1640_s22 }
 0x928   : > { %p2277_p3 = scmp.ne.s32.totalorder %s1640_s22, %s2276_s23  ;;  %p2284_p5 = scmp.lt.s32.totalorder %s2276_s23, %s2276_s23 }
 0x92a   : > { %p2278_p8 = pnand %p2277_p3, %p2072_p2  ;;  %p2285_p9 = por %p2284_p5, %p2283_p4 }
 0x92c   : > { %p2279_p11 = pneg %p2278_p8 }
 0x92e   : > { %p2286_p1 = pnand %p2285_p9, %p2279_p11 }
 0x930   : > { %2289 = shalt.err (!%p2286_p1)
}
 0x931   : > { %s2290_s28 = scalar_lea.hbm %s2823_s9, 32 }
 0x932   : > { %p2291_p6 = scmp.ne.s32.totalorder %s2823_s9, %s2290_s28  ;;  %p2296_p10 = scmp.lt.u32.totalorder %s2290_s28, %s2823_s9 }
 0x934   : > { %p2292_p7 = pnand %p2291_p6, %p2072_p2 }
 0x936   : > { %p2293_p12 = pneg %p2292_p7 }
 0x938   : > { %p2298_p13 = pnand %p2296_p10, %p2293_p12 }
 0x93a   : > { %2301 = shalt.err (!%p2298_p13)
}
 0x93b   : > { %2053 = dma.vmem_to_hbm [thread:$0]  (%p2072_p2), %s1640_s22, 32, %s2823_s9, [#allocation6]  }
 0x93c   : > { %2331 = dma.done.wait (%p2072_p2), [#allocation6], 32  }
 0x93d   : > { %2333 = vsyncadd (%p2072_p2), [#allocation6], 4294967264 }
 0x93e PF: > { %p22_p0 = scmp.ge.s32.totalorder %s2497_s17, 6   ;;  %s2838_s30 = smov %s2340_s10 }
 0x93f   : > { %s2839_s10 = smov %s2344_s11  ;;  %s2840_s11 = smov %s2508_s26 }
 0x940   : > { %s2841_s12 = smov %s2497_s17  ;;  %24 = sbr.rel (!%p22_p0) target bundleno = 6 (0x6), region = 110 }
 0x947   :  { %1652 = vsyncpa [#allocation5], 1 }
 0x948   :  { %1654 = vsyncpa [#allocation5 + $0x1], 1 }
 0x949   :  { %1655 = vsyncpa [#allocation9], 1 }
 0x94a   :  { %1656 = vsyncpa [#allocation6], 1 }
 0x94b   :  { %1658 = vsyncpa [#allocation6 + $0x1], 1 }
 0x94c   :  { %1659 = vsyncpa [#allocation7], 1 }
 0x94d   :  { %1661 = vsyncpa [#allocation7 + $0x1], 1 }

</bundles_post_ra>
